<compile_context>
chip_gen: v7x
topology: tpu7x:2x2x1
jax: 0.10.0
libtpu: 0.0.40
codegen_flags: <defaults>
</compile_context>

<pallas_src>
import jax
import jax.numpy as jnp
from jax.experimental import pallas as pl
from jax.experimental.pallas import tpu as pltpu

# Model hyper-parameters (mirroring the nn.Module __init__, with a small sequence
# length so MaxPool1d(kernel_size = L - K + 1) is still a global max over the conv
# output, exactly like kernel_size=596 for L=600).
VOCAB = 5000
EMBED = 64                     # Conv1d in_channels
OUT_CH = 256                   # Conv1d out_channels
KSIZE = 5                      # Conv1d kernel_size
NUM_CLASSES = 10
PAD_CLASSES = 128              # lane-dense output width (>= NUM_CLASSES, multiple of 128)
SEQ_LEN = 36                   # small stand-in for 600
L_OUT = SEQ_LEN - KSIZE + 1    # conv output length == MaxPool1d kernel_size (32)

TB = 8                         # samples per grid step (multiple of 8)


def _textcnn_kernel(x_ref, wc_ref, bc_ref, wf_ref, bf_ref, o_ref):
    # x_ref : (TB, SEQ_LEN, EMBED)      bf16 embedded tokens for TB batch elements
    # wc_ref: (KSIZE*EMBED, OUT_CH)     bf16 im2col conv weight, row k*EMBED+c = torch_w[o, c, k]
    # bc_ref: (1, OUT_CH)               f32
    # wf_ref: (OUT_CH, PAD_CLASSES)     bf16 linear weight (transposed, zero-padded lanes)
    # bf_ref: (1, PAD_CLASSES)          f32
    # o_ref : (TB, PAD_CLASSES)         f32 (lane-dense store; wrapper slices [:, :NUM_CLASSES])
    x = x_ref[...].astype(jnp.float32)                      # (TB, SEQ_LEN, EMBED)

    # im2col: cols[b, t, k*EMBED + c] = x[b, t + k, c]
    cols = jnp.concatenate([x[:, k:k + L_OUT, :] for k in range(KSIZE)], axis=-1)
    cols = cols.reshape(TB * L_OUT, KSIZE * EMBED).astype(jnp.bfloat16)

    # Conv1d as a single deep MXU matmul: (TB*L_OUT, K*C) @ (K*C, O), f32 accumulate.
    acc = jnp.dot(cols, wc_ref[...], preferred_element_type=jnp.float32)
    acc = jnp.maximum(acc + bc_ref[...], 0.0)               # bias + ReLU

    # MaxPool1d(kernel_size = L_OUT) -> global max over the time axis, per sample.
    pooled = jnp.max(acc.reshape(TB, L_OUT, OUT_CH), axis=1)   # (TB, OUT_CH)

    # TODO(synk): F.dropout(x, 0.8) runs in training mode in the original forward;
    # here we use inference semantics (identity).

    out = jnp.dot(pooled.astype(jnp.bfloat16), wf_ref[...],
                  preferred_element_type=jnp.float32) + bf_ref[...]
    o_ref[...] = out.astype(o_ref.dtype)                    # (TB, PAD_CLASSES)


def prepare_params(params):
    """One-time weight preprocessing (transpose / cast / pad) hoisted out of the forward."""
    emb_tbl, conv_w, conv_b, f1_w, f1_b = params
    emb_bf = emb_tbl.astype(jnp.bfloat16)
    # (O, C, K) -> (K, C, O) -> (K*C, O): row index k*EMBED + c.
    wc = jnp.transpose(conv_w, (2, 1, 0)).reshape(KSIZE * EMBED, OUT_CH).astype(jnp.bfloat16)
    bc = conv_b.reshape(1, OUT_CH).astype(jnp.float32)
    # (10, 256) -> (256, 10) -> zero-pad lanes to (256, 128) for a lane-dense output store.
    wf = jnp.zeros((OUT_CH, PAD_CLASSES), jnp.bfloat16)
    wf = wf.at[:, :NUM_CLASSES].set(jnp.transpose(f1_w, (1, 0)).astype(jnp.bfloat16))
    bf = jnp.zeros((1, PAD_CLASSES), jnp.float32)
    bf = bf.at[:, :NUM_CLASSES].set(f1_b.astype(jnp.float32))
    return emb_bf, wc, bc, wf, bf


def textcnn_forward(tokens, prepped):
    """tokens: int32 (B, SEQ_LEN) ids in [0, VOCAB). Returns f32 (B, NUM_CLASSES)."""
    emb_bf, wc, bc, wf, bf = prepped
    B = tokens.shape[0]
    Bp = ((B + TB - 1) // TB) * TB
    if Bp != B:
        tokens = jnp.pad(tokens, ((0, Bp - B), (0, 0)))

    # Embedding lookup (gather) kept in plain JAX glue; bf16 halves the (B, L, C) HBM traffic.
    # TODO(synk): could be fused in-kernel via scalar-prefetched ids + DMA gather for latency.
    x_emb = jnp.take(emb_bf, tokens, axis=0)                 # (Bp, SEQ_LEN, EMBED) bf16

    out = pl.pallas_call(
        _textcnn_kernel,
        out_shape=jax.ShapeDtypeStruct((Bp, PAD_CLASSES), jnp.float32),
        grid_spec=pltpu.PrefetchScalarGridSpec(
            num_scalar_prefetch=0,
            grid=(Bp // TB,),
            in_specs=[
                pl.BlockSpec((TB, SEQ_LEN, EMBED), lambda b: (b, 0, 0)),
                # grid-invariant weights: constant block index -> stay resident in VMEM
                pl.BlockSpec((KSIZE * EMBED, OUT_CH), lambda b: (0, 0)),
                pl.BlockSpec((1, OUT_CH), lambda b: (0, 0)),
                pl.BlockSpec((OUT_CH, PAD_CLASSES), lambda b: (0, 0)),
                pl.BlockSpec((1, PAD_CLASSES), lambda b: (0, 0)),
            ],
            out_specs=pl.BlockSpec((TB, PAD_CLASSES), lambda b: (b, 0)),
        ),
        compiler_params=pltpu.CompilerParams(
            dimension_semantics=("parallel",)),
    )(x_emb, wc, bc, wf, bf)
    return out[:B, :NUM_CLASSES]


def textcnn_reference(tokens, params):
    """Pure-JAX f32 reference (inference-mode dropout)."""
    emb_tbl, conv_w, conv_b, f1_w, f1_b = params
    x = jnp.take(emb_tbl, tokens, axis=0).astype(jnp.float32)       # (B, L, C)
    w = jnp.transpose(conv_w, (2, 1, 0)).astype(jnp.float32)        # (K, C, O)
    out = jnp.zeros((tokens.shape[0], L_OUT, OUT_CH), jnp.float32)
    for k in range(KSIZE):
        out = out + jnp.einsum('blc,co->blo', x[:, k:k + L_OUT, :], w[k])
    out = jnp.maximum(out + conv_b[None, None, :], 0.0)
    pooled = out.max(axis=1)                                        # (B, OUT_CH)
    return pooled @ f1_w.T.astype(jnp.float32) + f1_b.astype(jnp.float32)


def init_params(key):
    k_emb, k_cw, k_cb, k_fw, k_fb = jax.random.split(key, 5)
    emb_tbl = jax.random.normal(k_emb, (VOCAB, EMBED), jnp.float32)          # nn.Embedding ~ N(0,1)
    fan_in_c = EMBED * KSIZE
    lim_c = 1.0 / jnp.sqrt(fan_in_c)
    conv_w = jax.random.uniform(k_cw, (OUT_CH, EMBED, KSIZE), jnp.float32,
                                -lim_c, lim_c)                               # (O, C, K)
    conv_b = jax.random.uniform(k_cb, (OUT_CH,), jnp.float32, -lim_c, lim_c)
    lim_f = 1.0 / jnp.sqrt(OUT_CH)
    f1_w = jax.random.uniform(k_fw, (NUM_CLASSES, OUT_CH), jnp.float32,
                              -lim_f, lim_f)                                 # (10, 256)
    f1_b = jax.random.uniform(k_fb, (NUM_CLASSES,), jnp.float32, -lim_f, lim_f)
    return emb_tbl, conv_w, conv_b, f1_w, f1_b


if __name__ == "__main__":
    key = jax.random.PRNGKey(0)
    k_param, k_tok = jax.random.split(key)
    params = init_params(k_param)
    prepped = prepare_params(params)       # one-time weight prep (not per forward)

    B = 16                                  # 2 grid steps of TB=8 -> both v7x TCs usable
    tokens = jax.random.randint(k_tok, (B, SEQ_LEN), 0, VOCAB, dtype=jnp.int32)

    forward = jax.jit(textcnn_forward)
    out = jax.block_until_ready(forward(tokens, prepped))
    assert out.shape == (B, NUM_CLASSES) and out.dtype == jnp.float32

    ref = textcnn_reference(tokens, params)
    assert jnp.allclose(out, ref, atol=0.15, rtol=0.15)   # bf16 MXU vs f32 reference
    print("KERNEL_OK")
</pallas_src>

<mosaic_0001>
module attributes {stable_mosaic.version = 11 : i64} {
  func.func @_textcnn_kernel(%arg0: i32, %arg1: memref<8x36x64xbf16, #tpu.memory_space<vmem>>, %arg2: memref<320x256xbf16, #tpu.memory_space<vmem>>, %arg3: memref<1x256xf32, #tpu.memory_space<vmem>>, %arg4: memref<256x128xbf16, #tpu.memory_space<vmem>>, %arg5: memref<1x128xf32, #tpu.memory_space<vmem>>, %arg6: memref<8x128xf32, #tpu.memory_space<vmem>>) attributes {dimension_semantics = [#tpu.dimension_semantics<parallel>], iteration_bounds = array<i64: 2>, scalar_prefetch = 0 : i64, scratch_operands = 0 : i64, tpu.core_type = #tpu.core_type<tc>, window_params = [{transform_indices = @transform_0, window_bounds = array<i64: 8, 36, 64>}, {pipeline_mode = #tpu.pipeline_mode<synchronous>, transform_indices = @transform_1, window_bounds = array<i64: 320, 256>}, {pipeline_mode = #tpu.pipeline_mode<synchronous>, transform_indices = @transform_2, window_bounds = array<i64: 1, 256>}, {pipeline_mode = #tpu.pipeline_mode<synchronous>, transform_indices = @transform_3, window_bounds = array<i64: 256, 128>}, {pipeline_mode = #tpu.pipeline_mode<synchronous>, transform_indices = @transform_4, window_bounds = array<i64: 1, 128>}, {transform_indices = @transform_5, window_bounds = array<i64: 8, 128>}]} {
    %c0 = arith.constant 0 : index
    %c0_0 = arith.constant 0 : index
    %c0_1 = arith.constant 0 : index
    %0 = vector.load %arg1[%c0, %c0_0, %c0_1] : memref<8x36x64xbf16, #tpu.memory_space<vmem>>, vector<8x36x64xbf16>
    %1 = arith.extf %0 : vector<8x36x64xbf16> to vector<8x36x64xf32>
    %2 = vector.extract_strided_slice %1 {offsets = [0, 0, 0], sizes = [8, 32, 64], strides = [1, 1, 1]} : vector<8x36x64xf32> to vector<8x32x64xf32>
    %3 = vector.extract_strided_slice %1 {offsets = [0, 1, 0], sizes = [8, 32, 64], strides = [1, 1, 1]} : vector<8x36x64xf32> to vector<8x32x64xf32>
    %4 = vector.extract_strided_slice %1 {offsets = [0, 2, 0], sizes = [8, 32, 64], strides = [1, 1, 1]} : vector<8x36x64xf32> to vector<8x32x64xf32>
    %5 = vector.extract_strided_slice %1 {offsets = [0, 3, 0], sizes = [8, 32, 64], strides = [1, 1, 1]} : vector<8x36x64xf32> to vector<8x32x64xf32>
    %6 = vector.extract_strided_slice %1 {offsets = [0, 4, 0], sizes = [8, 32, 64], strides = [1, 1, 1]} : vector<8x36x64xf32> to vector<8x32x64xf32>
    %7 = tpu.concatenate %2, %3, %4, %5, %6 in 2 : vector<8x32x64xf32>, vector<8x32x64xf32>, vector<8x32x64xf32>, vector<8x32x64xf32>, vector<8x32x64xf32> -> vector<8x32x320xf32>
    %8 = vector.shape_cast %7 : vector<8x32x320xf32> to vector<256x320xf32>
    %9 = arith.truncf %8 : vector<256x320xf32> to vector<256x320xbf16>
    %c0_2 = arith.constant 0 : index
    %c0_3 = arith.constant 0 : index
    %10 = vector.load %arg2[%c0_2, %c0_3] : memref<320x256xbf16, #tpu.memory_space<vmem>>, vector<320x256xbf16>
    %cst = arith.constant dense<0.000000e+00> : vector<256x256xf32>
    %11 = tpu.matmul %9, %10, %cst {dimension_numbers = #tpu.dot_dimension_numbers<[1], [0], [0], [1], [0, 0, 1, 1], [], []>} : vector<256x320xbf16>, vector<320x256xbf16>, vector<256x256xf32> -> vector<256x256xf32>
    %c0_4 = arith.constant 0 : index
    %c0_5 = arith.constant 0 : index
    %12 = vector.load %arg3[%c0_4, %c0_5] : memref<1x256xf32, #tpu.memory_space<vmem>>, vector<1x256xf32>
    %13 = vector.broadcast %12 : vector<1x256xf32> to vector<256x256xf32>
    %14 = arith.addf %11, %13 : vector<256x256xf32>
    %cst_6 = arith.constant 0.000000e+00 : f32
    %15 = vector.broadcast %cst_6 : f32 to vector<256x256xf32>
    %16 = arith.maximumf %14, %15 : vector<256x256xf32>
    %17 = vector.shape_cast %16 : vector<256x256xf32> to vector<8x32x256xf32>
    %cst_7 = arith.constant dense<0xFF800000> : vector<8x256xf32>
    %18 = vector.multi_reduction <maximumf>, %17, %cst_7 [1] : vector<8x32x256xf32> to vector<8x256xf32>
    %19 = arith.truncf %18 : vector<8x256xf32> to vector<8x256xbf16>
    %c0_8 = arith.constant 0 : index
    %c0_9 = arith.constant 0 : index
    %20 = vector.load %arg4[%c0_8, %c0_9] : memref<256x128xbf16, #tpu.memory_space<vmem>>, vector<256x128xbf16>
    %cst_10 = arith.constant dense<0.000000e+00> : vector<8x128xf32>
    %21 = tpu.matmul %19, %20, %cst_10 {dimension_numbers = #tpu.dot_dimension_numbers<[1], [0], [0], [1], [0, 0, 1, 1], [], []>} : vector<8x256xbf16>, vector<256x128xbf16>, vector<8x128xf32> -> vector<8x128xf32>
    %c0_11 = arith.constant 0 : index
    %c0_12 = arith.constant 0 : index
    %22 = vector.load %arg5[%c0_11, %c0_12] : memref<1x128xf32, #tpu.memory_space<vmem>>, vector<1x128xf32>
    %23 = vector.broadcast %22 : vector<1x128xf32> to vector<8x128xf32>
    %24 = arith.addf %21, %23 : vector<8x128xf32>
    %c0_13 = arith.constant 0 : index
    %c0_14 = arith.constant 0 : index
    %25 = vector.load %arg6[%c0_13, %c0_14] : memref<8x128xf32, #tpu.memory_space<vmem>>, vector<8x128xf32>
    tpu.vector_store %arg6[%c0_13, %c0_14], %24 {strides = array<i32>} : memref<8x128xf32, #tpu.memory_space<vmem>>, vector<8x128xf32>,
    return
  }
  func.func @transform_0(%arg0: i32) -> (i32, i32, i32) {
    %c0_i32 = arith.constant 0 : i32
    %c0_i32_0 = arith.constant 0 : i32
    %c0_i32_1 = arith.constant 0 : i32
    return %arg0, %c0_i32, %c0_i32_0 : i32, i32, i32
  }
  func.func @transform_1(%arg0: i32) -> (i32, i32) {
    %c0_i32 = arith.constant 0 : i32
    %c0_i32_0 = arith.constant 0 : i32
    %c0_i32_1 = arith.constant 0 : i32
    return %c0_i32, %c0_i32_0 : i32, i32
  }
  func.func @transform_2(%arg0: i32) -> (i32, i32) {
    %c0_i32 = arith.constant 0 : i32
    %c0_i32_0 = arith.constant 0 : i32
    %c0_i32_1 = arith.constant 0 : i32
    return %c0_i32, %c0_i32_0 : i32, i32
  }
  func.func @transform_3(%arg0: i32) -> (i32, i32) {
    %c0_i32 = arith.constant 0 : i32
    %c0_i32_0 = arith.constant 0 : i32
    %c0_i32_1 = arith.constant 0 : i32
    return %c0_i32, %c0_i32_0 : i32, i32
  }
  func.func @transform_4(%arg0: i32) -> (i32, i32) {
    %c0_i32 = arith.constant 0 : i32
    %c0_i32_0 = arith.constant 0 : i32
    %c0_i32_1 = arith.constant 0 : i32
    return %c0_i32, %c0_i32_0 : i32, i32
  }
  func.func @transform_5(%arg0: i32) -> (i32, i32) {
    %c0_i32 = arith.constant 0 : i32
    %c0_i32_0 = arith.constant 0 : i32
    return %arg0, %c0_i32 : i32, i32
  }
}

</mosaic_0001>

<bundles_post_ra>
// kernel: textcnn_forward.1
= control target key start
LH: loop header
LB: loop body
LE: loop exit
PB: predicated region body
PF: predicated region fallthrough
CT: control target
= control target key end

     0   :  { %10 = vsyncpa [#allocation3], 0  ;;  %s3995_s0 = inlined_call_operand.vmem [shape: bf16[16,36,64], index: 0, kind: input, shape index: {}]   ;;  %s3996_s1 = inlined_call_operand.vmem [shape: bf16[320,256], index: 1, kind: input, shape index: {}]   ;;  %s3997_s2 = inlined_call_operand.vmem [shape: f32[1,256], index: 2, kind: input, shape index: {}]   ;;  %s3998_s3 = inlined_call_operand.vmem [shape: bf16[256,128], index: 3, kind: input, shape index: {}]   ;;  %s3999_s4 = inlined_call_operand.vmem [shape: f32[1,128], index: 4, kind: input, shape index: {}]   ;;  %s4000_s5 = inlined_call_operand.hbm [shape: f32[16,128], index: 5, kind: output, shape index: {}]  }
   0x1   :  { %12 = vsyncpa [#allocation3 + $0x1], 0  ;;  %s2894_s18 = smov 0   ;;  %s2896_s19 = smov 0  }
   0x2   :  { %s2898_s20 = smov 0   ;;  %s2900_s21 = smov 0  }
   0x3 LB: > { %s2915_s22 = sadd.s32 4294967295, %s2859_s21   ;;  %s2226_s23 = sadd.s32 4294967294, %s2859_s21   ;;  %s2859_s21 = sphi %s2900_s21, %s4031_s21   ;;  %s2855_s20 = sphi %s2898_s20, %s4030_s20   ;;  %s2851_s19 = sphi %s2896_s19, %s4029_s19   ;;  %s2847_s18 = sphi %s2894_s18, %s4028_s18  }
   0x4   : > { %s2919_s24 = sadd.s32 1, %s2859_s21   ;;  %s135_s25 = sadd.s32 1, %s2855_s20 }
   0x5   : > { %s132_s26 = ssub.s32 %s2859_s21, %s2919_s24  ;;  %p145_p0 = scmp.ne.s32.totalorder %s2855_s20, %s2851_s19 }
   0x6   : > { %p133_p1 = scmp.eq.s32.totalorder %s132_s26, 0  ;;  %p146_p2 = scmp.eq.s32.totalorder %s2915_s22, 1 }
   0x7   : > { %p151_p3 = scmp.ne.s32.totalorder %s2851_s19, %s2847_s18  ;;  %p152_p4 = scmp.eq.s32.totalorder %s2226_s23, 1 }
   0x8   : > { %s2930_s27 = scalar_select %p133_p1, %s2855_s20, %s135_s25  }
   0x9   : > { %p2932_p5 = por %p146_p2, %p145_p0  ;;  %p2936_p6 = por %p152_p4, %p151_p3 }
   0xa   : > { %p2229_p7 = scmp.ge.s32.totalorder %s2859_s21, 1  ;;  %p192_p8 = scmp.lt.s32.totalorder %s2859_s21, 3 }
   0xc   : > { %p193_p9 = pnand %p2229_p7, %p192_p8 }
   0xe   : > { %196 = sbr.rel (%p193_p9) target bundleno = 754 (0x2f2), region = 40 }
  0x15   : > { %s2231_s30 = sshll.u32 %s2915_s22, 3  ;;  %v2721_v0 = vld [vmem:[%s3996_s1 + $0x4] ss:$8 sps:$4 sm:$0xff]   ;;  %v2723_v1 = vld [vmem:[%s3996_s1] ss:$8 sps:$4 sm:$0xff]   ;;  %vm623_vm0 = vcmask 1044480  }
  0x16   : > { %p222_p10 = scmp.lt.s32.totalorder %s2231_s30, 15  ;;  %v2724_v2 = vld [vmem:[%s3996_s1 + $0x14] ss:$8 sps:$4 sm:$0xff]   ;;  %1310 = vmatprep.subr.bf16.mxu0 %v2721_v0  ;;  %v2726_v3 = vld [vmem:[%s3996_s1 + $0x10] ss:$8 sps:$4 sm:$0xff]   ;;  %vm349_vm1 = vcmask 1046528  }
  0x17   : > { %1311 = vmatpush1.bf16.msra.mxu0 %v2723_v1  ;;  %v2727_v4 = vld [vmem:[%s3996_s1 + $0x24] ss:$8 sps:$4 sm:$0xff]   ;;  %v2729_v5 = vld [vmem:[%s3996_s1 + $0x20] ss:$8 sps:$4 sm:$0xff]   ;;  %v2730_v15 = vld [vmem:[%s3996_s1 + $0x34] ss:$8 sps:$4 sm:$0xff]  }
  0x18   : > { %s4033_s30 = smov (!%p222_p10, %s2231_s30), 15  ;;  %1312 = vmatprep.subr.bf16.mxu0 %v2724_v2  ;;  %v4001_v16 = vmov 0   ;;  %v2732_v29 = vld [vmem:[%s3996_s1 + $0x30] ss:$8 sps:$4 sm:$0xff]   ;;  %v2733_v34 = vld [vmem:[%s3996_s1 + $0x44] ss:$8 sps:$4 sm:$0xff]  }
  0x19   : > { %s2519_s14 = smul.u32 20, %s4033_s30  ;;  %1535 = vmatprep.mubr.bf16.mxu1 %v4001_v16  ;;  %s2862_s12 = smov 64   ;;  %v2735_v49 = vld [vmem:[%s3996_s1 + $0x40] ss:$8 sps:$4 sm:$0xff]   ;;  %v2736_v54 = vld [vmem:[%s3996_s1 + $0x54] ss:$8 sps:$4 sm:$0xff]  }
  0x1a   : > { %vm792_vm2 = vcmask 1043456   ;;  %vm897_vm3 = vcmask 523264   ;;  %vm518_vm4 = vcmask 1045504   ;;  %vm1991_vm5 = vcmask 1041409   ;;  %s218_s26 = sand.u32 1, %s2851_s19   ;;  %s2307_s8 = sshll.u32 %s2915_s22, 7 }
  0x1b   : > { %s2961_s25 = scalar_lea.vmem %s3995_s0, %s2519_s14  ;;  %1313 = vmatpush1.bf16.msra.mxu0 %v2726_v3  ;;  %vm1993_vm6 = vcmask 1042434   ;;  %vm1995_vm7 = vcmask 1043459   ;;  %vm1997_vm8 = vcmask 1044484   ;;  %vm1999_vm9 = vcmask 1045509   ;;  %s2230_s6 = sshll.u32 %s218_s26, 3 }
  0x1c   : > { %v2311_v6 = vld [vmem:[%s2961_s25] sm:$0xff]   ;;  %v2358_v7 = vld [vmem:[%s2961_s25 + $0x8] sm:$0xff]   ;;  %v233_v8 = vld [vmem:[%s2961_s25 + $0x10] sm:$0x3]  ;;  %1314 = vmatprep.subr.bf16.mxu0 %v2727_v4  ;;  %vm2001_vm10 = vcmask 1046534   ;;  %vm2003_vm11 = vcmask 1047559   ;;  %s3953_s14 = scalar_lea.hbm %s4000_s5, %s2307_s8 }
  0x1d   : > { %v2969_v9 = vunpack.c.l.bf16 %v2311_v6  ;;  %v2971_v10 = vunpack.c.h.bf16 %v2311_v6  ;;  %v2973_v11 = vunpack.c.l.bf16 %v2358_v7  ;;  %v2975_v12 = vunpack.c.h.bf16 %v2358_v7  ;;  %v234_v13 = vld [vmem:[%s2961_s25 + $0x14] ss:$12 sps:$4 sm:$0xff]   ;;  %v2359_v14 = vld [vmem:[%s2961_s25 + $0x18] sm:$0xff]   ;;  %v238_v39 = vld [vmem:[%s2961_s25 + $0x24] sm:$0x3]  ;;  %s220_s9 = scalar_lea.vmem [#allocation2], %s2230_s6 }
  0x1e   : > { %v2983_v17 = vunpack.c.l.bf16 %v233_v8  ;;  %v2985_v18 = vunpack.c.l.bf16 %v2359_v14  ;;  %v2987_v19 = vunpack.c.h.bf16 %v2359_v14  ;;  %v2989_v20 = vunpack.c.l.bf16 %v234_v13  ;;  %v2360_v44 = vld [vmem:[%s2961_s25 + $0x28] sm:$0xff]   ;;  %v2361_v59 = vld [vmem:[%s2961_s25 + $0x30] sm:$0xff]   ;;  %v243_v4 = vld [vmem:[%s2961_s25 + $0x38] sm:$0x3]  ;;  %s2167_s10 = sshll.u32 %s220_s9, 4  ;;  %s2154_s15 = scalar_lea.sflag [#allocation3], %s218_s26  ;;  %s3955_s10 = int_to_ptr.vmem [resolvable:$true] %s2167_s10 }
  0x1f   : > { %v624_v21 = vrot.slane %v2969_v9, 3  ;;  %v625_v22 = vrot.slane %v2971_v10, 3  ;;  %v627_v23 = vrot.slane %v2973_v11, 3  ;;  %v350_v24 = vrot.slane %v2969_v9, 1  ;;  %1315 = vmatpush1.bf16.msra.mxu0 %v2729_v5  ;;  %v2738_v5 = vld [vmem:[%s3996_s1 + $0x50] ss:$8 sps:$4 sm:$0xff]  }
  0x20   : > { %v351_v25 = vrot.slane %v2971_v10, 1  ;;  %v353_v26 = vrot.slane %v2973_v11, 1  ;;  %v629_v27 = vrot.slane %v2975_v12, 3  ;;  %v631_v28 = vrot.slane %v2983_v17, 3  ;;  %1316 = vmatprep.subr.bf16.mxu0 %v2730_v15  ;;  %v2739_v14 = vld [vmem:[%s3996_s1 + $0x64] ss:$8 sps:$4 sm:$0xff]  }
  0x21   : > { %v626_v30 = vsel %vm623_vm0, %v624_v21, %v625_v22  ;;  %v628_v31 = vsel %vm623_vm0, %v625_v22, %v627_v23  ;;  %v355_v32 = vrot.slane %v2975_v12, 1  ;;  %v357_v33 = vrot.slane %v2983_v17, 1  ;;  %s2797_s16 = scalar_lea.vmem %s3955_s10, 128  ;;  %s2863_s22 = smov [#allocation2]  }
  0x22   : > { %v2561_v35 = vpack.i.bf16 %v628_v31, %v626_v30  ;;  %v352_v36 = vsel %vm349_vm1, %v350_v24, %v351_v25  ;;  %v354_v37 = vsel %vm349_vm1, %v351_v25, %v353_v26  ;;  %v630_v38 = vsel %vm623_vm0, %v627_v23, %v629_v27  ;;  %v2362_v24 = vld [vmem:[%s2961_s25 + $0x40] sm:$0xff]   ;;  %p2798_p11 = scmp.ne.s32.totalorder %s3955_s10, %s2797_s16 }
  0x23   : > { %v2566_v40 = vpack.i.bf16 %v354_v37, %v352_v36  ;;  %v632_v41 = vsel %vm623_vm0, %v629_v27, %v631_v28  ;;  %v356_v42 = vsel %vm349_vm1, %v353_v26, %v355_v32  ;;  %v358_v43 = vsel %vm349_vm1, %v355_v32, %v357_v33  ;;  %1317 = vmatpush1.bf16.msra.mxu0 %v2732_v29  ;;  %v244_v28 = vld [vmem:[%s2961_s25 + $0x3c] ss:$12 sps:$4 sm:$0xff]  }
  0x24   : > { %2562 = vrot.lane.b32.xlu0 %v2561_v35, %s2862_s12  ;;  %v2571_v45 = vpack.i.bf16 %v632_v41, %v630_v38  ;;  %v2576_v46 = vpack.i.bf16 %v358_v43, %v356_v42  ;;  %v633_v47 = vrot.slane %v2989_v20, 3  ;;  %v634_v48 = vrot.slane %v2985_v18, 3  ;;  %1318 = vmatprep.subr.bf16.mxu0 %v2733_v34  ;;  %v2741_v33 = vld [vmem:[%s3996_s1 + $0x60] ss:$8 sps:$4 sm:$0xff]   ;;  %v2742_v38 = vld [vmem:[%s3996_s1 + $0x74] ss:$8 sps:$4 sm:$0xff]   ;;  %p2799_p12 = pnand %p2798_p11, %p2932_p5 }
  0x25   : > { %v636_v50 = vrot.slane %v2987_v19, 3  ;;  %v359_v51 = vrot.slane %v2989_v20, 1  ;;  %v360_v52 = vrot.slane %v2985_v18, 1  ;;  %v362_v53 = vrot.slane %v2987_v19, 1 }
  0x26   : > { %2572 = vrot.lane.b32.xlu1 %v2571_v45, %s2862_s12  ;;  %v635_v55 = vsel %vm623_vm0, %v633_v47, %v634_v48  ;;  %v3032_v56 = vunpack.c.h.bf16 %v234_v13  ;;  %v3034_v57 = vunpack.c.l.bf16 %v238_v39  ;;  %v3036_v58 = vunpack.c.l.bf16 %v2360_v44  ;;  %v2757_v39 = vld [vmem:[%s3996_s1 + $0x104] ss:$8 sps:$4 sm:$0xff]   ;;  %p2800_p13 = pneg %p2799_p12 }
  0x27   : > { %v637_v60 = vsel %vm623_vm0, %v634_v48, %v636_v50  ;;  %v361_v61 = vsel %vm349_vm1, %v359_v51, %v360_v52  ;;  %v363_v62 = vsel %vm349_vm1, %v360_v52, %v362_v53  ;;  %v3042_v63 = vunpack.c.h.bf16 %v2360_v44  ;;  %1319 = vmatpush1.bf16.msra.mxu0 %v2735_v49  ;;  %v248_v48 = vld [vmem:[%s2961_s25 + $0x4c] sm:$0x3]  ;;  %v2363_v49 = vld [vmem:[%s2961_s25 + $0x50] sm:$0xff]   ;;  %1503 = vmatprep.subr.bf16.mxu1 %v2757_v39 }
  0x28   : > { %2567 = vrot.lane.b32.xlu0 %v2566_v40, %s2862_s12  ;;  %v2581_v0 = vpack.i.bf16 %v637_v60, %v635_v55  ;;  %v2586_v1 = vpack.i.bf16 %v363_v62, %v361_v61  ;;  %v638_v2 = vrot.slane %v3032_v56, 3  ;;  %v640_v3 = vrot.slane %v3034_v57, 3  ;;  %1320 = vmatprep.subr.bf16.mxu0 %v2736_v54  ;;  %v2761_v55 = vld [vmem:[%s3996_s1 + $0x100] ss:$8 sps:$4 sm:$0xff]  }
  0x29   : > { %v364_v6 = vrot.slane %v3032_v56, 1  ;;  %v366_v7 = vrot.slane %v3034_v57, 1  ;;  %v3053_v8 = vunpack.c.l.bf16 %v2361_v59  ;;  %v642_v13 = vrot.slane %v3036_v58, 3  ;;  %1504 = vmatpush1.bf16.msra.mxu1 %v2761_v55 }
  0x2a   : > { %2577 = vrot.lane.b32.xlu1 %v2576_v46, %s2862_s12  ;;  %v639_v15 = vsel %vm623_vm0, %v636_v50, %v638_v2  ;;  %v641_v21 = vsel %vm623_vm0, %v638_v2, %v640_v3  ;;  %v643_v22 = vrot.slane %v3042_v63, 3  ;;  %v368_v23 = vrot.slane %v3036_v58, 1  ;;  %v2744_v50 = vld [vmem:[%s3996_s1 + $0x70] ss:$8 sps:$4 sm:$0xff]  }
  0x2b   : > { %v365_v25 = vsel %vm349_vm1, %v362_v53, %v364_v6  ;;  %v367_v26 = vsel %vm349_vm1, %v364_v6, %v366_v7  ;;  %v645_v27 = vrot.slane %v3053_v8, 3  ;;  %v2591_v29 = vpack.i.bf16 %v641_v21, %v639_v15  ;;  %1321 = vmatpush1.bf16.msra.mxu0 %v2738_v5  ;;  %v2767_v6 = vld [vmem:[%s3996_s1 + $0x110] ss:$8 sps:$4 sm:$0xff]  }
  0x2c   : > { %2582 = vrot.lane.b32.xlu0 %v2581_v0, %s2862_s12  ;;  %v644_v30 = vsel %vm623_vm0, %v642_v13, %v643_v22  ;;  %v369_v31 = vrot.slane %v3042_v63, 1  ;;  %v371_v32 = vrot.slane %v3053_v8, 1  ;;  %v3077_v35 = vunpack.c.h.bf16 %v2361_v59  ;;  %1322 = vmatprep.subr.bf16.mxu0 %v2739_v14  ;;  %v2745_v0 = vld [vmem:[%s3996_s1 + $0x84] ss:$8 sps:$4 sm:$0xff]  }
  0x2d   : > { %v646_v34 = vsel %vm623_vm0, %v643_v22, %v645_v27  ;;  %v3079_v36 = vunpack.c.l.bf16 %v243_v4  ;;  %v3081_v37 = vunpack.c.l.bf16 %v2362_v24  ;;  %v2596_v40 = vpack.i.bf16 %v367_v26, %v365_v25  ;;  %v2364_v25 = vld [vmem:[%s2961_s25 + $0x58] sm:$0xff]   ;;  %v2747_v26 = vld [vmem:[%s3996_s1 + $0x80] ss:$8 sps:$4 sm:$0xff]  }
  0x2e   : > { %2587 = vrot.lane.b32.xlu1 %v2586_v1, %s2862_s12  ;;  %v370_v41 = vsel %vm349_vm1, %v368_v23, %v369_v31  ;;  %v372_v42 = vsel %vm349_vm1, %v369_v31, %v371_v32  ;;  %v3092_v43 = vunpack.c.h.bf16 %v2362_v24  ;;  %v2601_v44 = vpack.i.bf16 %v646_v34, %v644_v30  ;;  %v2763_v1 = vld [vmem:[%s3996_s1 + $0x114] ss:$8 sps:$4 sm:$0xff]   ;;  %v253_v31 = vld [vmem:[%s2961_s25 + $0x60] sm:$0x3] }
  0x2f   : > { %v647_v45 = vrot.slane %v3077_v35, 3  ;;  %v649_v46 = vrot.slane %v3079_v36, 3  ;;  %v373_v47 = vrot.slane %v3077_v35, 1  ;;  %v375_v51 = vrot.slane %v3079_v36, 1  ;;  %1323 = vmatpush1.bf16.msra.mxu0 %v2741_v33  ;;  %1505 = vmatprep.subr.bf16.mxu1 %v2763_v1 }
  0x30   : > { %2592 = vrot.lane.b32.xlu0 %v2591_v29, %s2862_s12  ;;  %v3104_v52 = vunpack.c.l.bf16 %v244_v28  ;;  %v652_v53 = vrot.slane %v3081_v37, 3  ;;  %v654_v54 = vrot.slane %v3092_v43, 3  ;;  %v2606_v59 = vpack.i.bf16 %v372_v42, %v370_v41  ;;  %1324 = vmatprep.subr.bf16.mxu0 %v2742_v38  ;;  %v2365_v41 = vld [vmem:[%s2961_s25 + $0x68] sm:$0xff]  }
  0x31   : > { %v648_v60 = vsel %vm623_vm0, %v645_v27, %v647_v45  ;;  %v650_v61 = vsel %vm623_vm0, %v647_v45, %v649_v46  ;;  %v378_v62 = vrot.slane %v3081_v37, 1  ;;  %v374_v3 = vsel %vm349_vm1, %v371_v32, %v373_v47  ;;  %v2769_v27 = vld [vmem:[%s3996_s1 + $0x124] ss:$8 sps:$4 sm:$0xff]   ;;  %v2748_v32 = vld [vmem:[%s3996_s1 + $0x94] ss:$8 sps:$4 sm:$0xff]   ;;  %1506 = vmatpush1.bf16.msra.mxu1 %v2767_v6 }
  0x32   : > { %2597 = vrot.lane.b32.xlu1 %v2596_v40, %s2862_s12  ;;  %v2611_v2 = vpack.i.bf16 %v650_v61, %v648_v60  ;;  %v376_v4 = vsel %vm349_vm1, %v373_v47, %v375_v51  ;;  %v651_v5 = vrot.slane %v3104_v52, 3  ;;  %v655_v7 = vsel %vm623_vm0, %v652_v53, %v654_v54  ;;  %v3159_v40 = vld [vmem:[%s2961_s25 + $0x64] ss:$12 sps:$4 sm:$0xff]   ;;  %v2773_v42 = vld [vmem:[%s3996_s1 + $0x120] ss:$8 sps:$4 sm:$0xff]   ;;  %1507 = vmatprep.subr.bf16.mxu1 %v2769_v27 }
  0x33   : > { %v377_v13 = vrot.slane %v3104_v52, 1  ;;  %v380_v14 = vrot.slane %v3092_v43, 1  ;;  %v3130_v15 = vunpack.c.h.bf16 %v244_v28  ;;  %v3134_v22 = vunpack.c.l.bf16 %v248_v48  ;;  %1325 = vmatpush1.bf16.msra.mxu0 %v2744_v50  ;;  %v2750_v47 = vld [vmem:[%s3996_s1 + $0x90] ss:$8 sps:$4 sm:$0xff]   ;;  %v2751_v61 = vld [vmem:[%s3996_s1 + $0xa4] ss:$8 sps:$4 sm:$0xff]  }
  0x34   : > { %2602 = vrot.lane.b32.xlu0 %v2601_v44, %s2862_s12  ;;  %v653_v21 = vsel %vm623_vm0, %v651_v5, %v652_v53  ;;  %v3136_v23 = vunpack.c.l.bf16 %v2363_v49  ;;  %v3138_v24 = vunpack.c.h.bf16 %v2363_v49  ;;  %v2616_v28 = vpack.i.bf16 %v376_v4, %v374_v3  ;;  %1326 = vmatprep.subr.bf16.mxu0 %v2745_v0  ;;  %v2775_v53 = vld [vmem:[%s3996_s1 + $0x134] ss:$8 sps:$4 sm:$0xff]   ;;  %v2779_v3 = vld [vmem:[%s3996_s1 + $0x130] ss:$8 sps:$4 sm:$0xff]  }
  0x35   : > { %v379_v29 = vsel %vm349_vm1, %v377_v13, %v378_v62  ;;  %v656_v30 = vrot.slane %v3130_v15, 3  ;;  %v381_v33 = vsel %vm349_vm1, %v378_v62, %v380_v14  ;;  %v658_v34 = vrot.slane %v3134_v22, 3  ;;  %1508 = vmatpush1.bf16.msra.mxu1 %v2773_v42  ;;  %v2753_v13 = vld [vmem:[%s3996_s1 + $0xa0] ss:$8 sps:$4 sm:$0xff]  }
  0x36   : > { %2607 = vrot.lane.b32.xlu1 %v2606_v59, %s2862_s12  ;;  %v382_v38 = vrot.slane %v3130_v15, 1  ;;  %v384_v39 = vrot.slane %v3134_v22, 1  ;;  %v2621_v44 = vpack.i.bf16 %v655_v7, %v653_v21  ;;  %v3166_v46 = vunpack.c.l.bf16 %v2364_v25  ;;  %1509 = vmatprep.subr.bf16.mxu1 %v2775_v53 }
  0x37   : > { %v657_v45 = vsel %vm623_vm0, %v654_v54, %v656_v30  ;;  %v659_v48 = vsel %vm623_vm0, %v656_v30, %v658_v34  ;;  %v660_v49 = vrot.slane %v3136_v23, 3  ;;  %v661_v50 = vrot.slane %v3138_v24, 3  ;;  %1327 = vmatpush1.bf16.msra.mxu0 %v2747_v26 }
  0x38   : > { %2612 = vrot.lane.b32.xlu0 %v2611_v2, %s2862_s12  ;;  %v386_v51 = vrot.slane %v3136_v23, 1  ;;  %v2626_v54 = vpack.i.bf16 %v381_v33, %v379_v29  ;;  %v383_v55 = vsel %vm349_vm1, %v380_v14, %v382_v38  ;;  %v385_v59 = vsel %vm349_vm1, %v382_v38, %v384_v39  ;;  %1328 = vmatprep.subr.bf16.mxu0 %v2748_v32  ;;  %v2366_v32 = vld [vmem:[%s2961_s25 + $0x78] sm:$0xff]   ;;  %v2367_v38 = vld [vmem:[%s2961_s25 + $0x80] sm:$0xff]  }
  0x39   : > { %v663_v60 = vrot.slane %v3166_v46, 3  ;;  %v387_v62 = vrot.slane %v3138_v24, 1  ;;  %v389_v0 = vrot.slane %v3166_v46, 1  ;;  %v3188_v1 = vunpack.c.h.bf16 %v2364_v25  ;;  %v2754_v39 = vld [vmem:[%s3996_s1 + $0xb4] ss:$8 sps:$4 sm:$0xff]   ;;  %1510 = vmatpush1.bf16.msra.mxu1 %v2779_v3 }
  0x3a   : > { %2617 = vrot.lane.b32.xlu1 %v2616_v28, %s2862_s12  ;;  %v3190_v2 = vunpack.c.l.bf16 %v253_v31  ;;  %v2631_v4 = vpack.i.bf16 %v659_v48, %v657_v45  ;;  %v3195_v5 = vunpack.c.l.bf16 %v2365_v41  ;;  %v3197_v6 = vunpack.c.h.bf16 %v2365_v41  ;;  %v258_v31 = vld [vmem:[%s2961_s25 + $0x74] sm:$0x3]  ;;  %v2756_v45 = vld [vmem:[%s3996_s1 + $0xb0] ss:$8 sps:$4 sm:$0xff]  }
  0x3b   : > { %v3200_v7 = vunpack.c.l.bf16 %v3159_v40  ;;  %v662_v14 = vsel %vm623_vm0, %v660_v49, %v661_v50  ;;  %v664_v21 = vsel %vm623_vm0, %v661_v50, %v663_v60  ;;  %v388_v25 = vsel %vm349_vm1, %v386_v51, %v387_v62  ;;  %1329 = vmatpush1.bf16.msra.mxu0 %v2750_v47  ;;  %v2759_v51 = vld [vmem:[%s3996_s1 + $0xc4] ss:$8 sps:$4 sm:$0xff]  }
  0x3c   : > { %2622 = vrot.lane.b32.xlu0 %v2621_v44, %s2862_s12  ;;  %v665_v26 = vrot.slane %v3188_v1, 3  ;;  %v390_v27 = vsel %vm349_vm1, %v387_v62, %v389_v0  ;;  %v667_v28 = vrot.slane %v3190_v2, 3  ;;  %v391_v29 = vrot.slane %v3188_v1, 1  ;;  %1330 = vmatprep.subr.bf16.mxu0 %v2751_v61 }
  0x3d   : > { %4011 = vst [vmem:[#allocation5_spill] sm:$0xff] %v3200_v7  ;;  %v393_v30 = vrot.slane %v3190_v2, 1  ;;  %v2636_v33 = vpack.i.bf16 %v385_v59, %v383_v55  ;;  %v669_v34 = vrot.slane %v3200_v7, 3  ;;  %v2641_v41 = vpack.i.bf16 %v664_v21, %v662_v14 }
  0x3e   : > { %2627 = vrot.lane.b32.xlu1 %v2626_v54, %s2862_s12  ;;  %v670_v42 = vrot.slane %v3195_v5, 3  ;;  %v672_v44 = vrot.slane %v3197_v6, 3  ;;  %v2646_v47 = vpack.i.bf16 %v390_v27, %v388_v25  ;;  %v666_v48 = vsel %vm623_vm0, %v663_v60, %v665_v26 }
  0x3f   : > { %v668_v49 = vsel %vm623_vm0, %v665_v26, %v667_v28  ;;  %v392_v50 = vsel %vm349_vm1, %v389_v0, %v391_v29  ;;  %v394_v53 = vsel %vm349_vm1, %v391_v29, %v393_v30  ;;  %v395_v54 = vrot.slane %v3200_v7, 1  ;;  %1331 = vmatpush1.bf16.msra.mxu0 %v2753_v13  ;;  %v2762_v13 = vld [vmem:[%s3996_s1 + $0xc0] ss:$8 sps:$4 sm:$0xff]   ;;  %v2765_v29 = vld [vmem:[%s3996_s1 + $0xd4] ss:$8 sps:$4 sm:$0xff]  }
  0x40   : > { %2632 = vrot.lane.b32.xlu0 %v2631_v4, %s2862_s12  ;;  %v396_v55 = vrot.slane %v3195_v5, 1  ;;  %v3238_v59 = vunpack.c.h.bf16 %v3159_v40  ;;  %v3241_v60 = vunpack.c.l.bf16 %v258_v31  ;;  %v3243_v61 = vunpack.c.l.bf16 %v2366_v32  ;;  %1332 = vmatprep.subr.bf16.mxu0 %v2754_v39  ;;  %v263_v28 = vld [vmem:[%s2961_s25 + $0x88] sm:$0x3]  ;;  %v264_v39 = vld [vmem:[%s2961_s25 + $0x8c] ss:$12 sps:$4 sm:$0xff]  }
  0x41   : > { %v3245_v62 = vunpack.c.h.bf16 %v2366_v32  ;;  %v3247_v0 = vunpack.c.l.bf16 %v2367_v38  ;;  %v2651_v3 = vpack.i.bf16 %v668_v49, %v666_v48  ;;  %v671_v4 = vsel %vm623_vm0, %v669_v34, %v670_v42 }
  0x42   : > { %2637 = vrot.lane.b32.xlu1 %v2636_v33, %s2862_s12  ;;  %v398_v14 = vrot.slane %v3197_v6, 1  ;;  %v674_v40 = vrot.slane %v3238_v59, 3  ;;  %v673_v21 = vsel %vm623_vm0, %v670_v42, %v672_v44  ;;  %v676_v25 = vrot.slane %v3241_v60, 3 }
  0x43   : > { %v400_v26 = vrot.slane %v3238_v59, 1  ;;  %v402_v27 = vrot.slane %v3241_v60, 1  ;;  %v678_v30 = vrot.slane %v3243_v61, 3  ;;  %v679_v31 = vrot.slane %v3245_v62, 3  ;;  %1333 = vmatpush1.bf16.msra.mxu0 %v2756_v45  ;;  %v2768_v45 = vld [vmem:[%s3996_s1 + $0xd0] ss:$8 sps:$4 sm:$0xff]  }
  0x44   : > { %2642 = vrot.lane.b32.xlu0 %v2641_v41, %s2862_s12  ;;  %v2656_v32 = vpack.i.bf16 %v394_v53, %v392_v50  ;;  %v681_v33 = vrot.slane %v3247_v0, 3  ;;  %v404_v34 = vrot.slane %v3243_v61, 1  ;;  %1334 = vmatprep.subr.bf16.mxu0 %v2759_v51  ;;  %v2661_v41 = vpack.i.bf16 %v673_v21, %v671_v4 }
  0x45   : > { %v397_v42 = vsel %vm349_vm1, %v395_v54, %v396_v55  ;;  %v399_v48 = vsel %vm349_vm1, %v396_v55, %v398_v14  ;;  %v675_v49 = vsel %vm623_vm0, %v672_v44, %v674_v40  ;;  %v405_v50 = vrot.slane %v3245_v62, 1  ;;  %v2368_v54 = vld [vmem:[%s2961_s25 + $0x90] sm:$0xff]  }
  0x46   : > { %2647 = vrot.lane.b32.xlu1 %v2646_v47, %s2862_s12  ;;  %v677_v47 = vsel %vm623_vm0, %v674_v40, %v676_v25  ;;  %v407_v51 = vrot.slane %v3247_v0, 1  ;;  %v3280_v53 = vunpack.c.h.bf16 %v2367_v38  ;;  %v3282_v4 = vunpack.c.l.bf16 %v263_v28  ;;  %v2771_v38 = vld [vmem:[%s3996_s1 + $0xe4] ss:$8 sps:$4 sm:$0xff]  }
  0x47   : > { %1335 = vmatpush1.bf16.msra.mxu0 %v2762_v13  ;;  %v2666_v44 = vpack.i.bf16 %v399_v48, %v397_v42  ;;  %v401_v55 = vsel %vm349_vm1, %v398_v14, %v400_v26  ;;  %v403_v21 = vsel %vm349_vm1, %v400_v26, %v402_v27  ;;  %v680_v40 = vsel %vm623_vm0, %v678_v30, %v679_v31  ;;  %v2774_v30 = vld [vmem:[%s3996_s1 + $0xe0] ss:$8 sps:$4 sm:$0xff]   ;;  %v268_v42 = vld [vmem:[%s2961_s25 + $0x9c] sm:$0x3]  ;;  %s2801_s25 = sshll.u32 %s2863_s22, 4  ;;  %s2802_s25 = int_to_ptr.vmem [resolvable:$false] %s2801_s25 }
  0x48   : > { %2652 = vrot.lane.b32.xlu0 %v2651_v3, %s2862_s12  ;;  %1336 = vmatprep.subr.bf16.mxu0 %v2765_v29  ;;  %v2671_v3 = vpack.i.bf16 %v677_v47, %v675_v49  ;;  %v683_v25 = vrot.slane %v3280_v53, 3  ;;  %v3290_v16 = vunpack.c.l.bf16 %v264_v39  ;;  %v682_v13 = vsel %vm623_vm0, %v679_v31, %v681_v33  ;;  %s2803_s17 = scalar_lea.vmem %s2802_s25, 256  ;;  %p2804_p0 = scmp.lt.s32.totalorder %s3955_s10, %s2802_s25 }
  0x49   : > { %v406_v14 = vsel %vm349_vm1, %v404_v34, %v405_v50  ;;  %v408_v26 = vsel %vm349_vm1, %v405_v50, %v407_v51  ;;  %v3299_v27 = vunpack.c.l.bf16 %v2368_v54  ;;  %v685_v28 = vrot.slane %v3282_v4, 3  ;;  %p2805_p1 = scmp.lt.s32.totalorder %s2803_s17, %s2797_s16 }
  0x4a   : > { %2657 = vrot.lane.b32.xlu1 %v2656_v32, %s2862_s12  ;;  %v3302_v29 = vunpack.c.h.bf16 %v2368_v54  ;;  %v2676_v32 = vpack.i.bf16 %v403_v21, %v401_v55  ;;  %v409_v31 = vrot.slane %v3280_v53, 1  ;;  %v411_v34 = vrot.slane %v3282_v4, 1 }
  0x4b   : > { %1337 = vmatpush1.bf16.msra.mxu0 %v2768_v45  ;;  %v2681_v48 = vpack.i.bf16 %v682_v13, %v680_v40  ;;  %v2686_v49 = vpack.i.bf16 %v408_v26, %v406_v14  ;;  %v684_v45 = vsel %vm623_vm0, %v681_v33, %v683_v25  ;;  %v687_v47 = vrot.slane %v3290_v16, 3  ;;  %v2780_v33 = vld [vmem:[%s3996_s1 + $0xf0] ss:$8 sps:$4 sm:$0xff]   ;;  %p2806_p2 = por %p2805_p1, %p2804_p0 }
  0x4c   : > { %2662 = vrot.lane.b32.xlu0 %v2661_v41, %s2862_s12  ;;  %4012 = vst [vmem:[#allocation6_spill] sm:$0xff] %v3302_v29  ;;  %v2777_v41 = vld [vmem:[%s3996_s1 + $0xf4] ss:$8 sps:$4 sm:$0xff]   ;;  %1338 = vmatprep.subr.bf16.mxu0 %v2771_v38  ;;  %v688_v50 = vrot.slane %v3299_v27, 3  ;;  %v793_v54 = vrot.slane %v2969_v9, 4  ;;  %v796_v55 = vrot.slane %v2973_v11, 4  ;;  %v686_v21 = vsel %vm623_vm0, %v683_v25, %v685_v28 }
  0x4d   : > { %v690_v40 = vrot.slane %v3302_v29, 3  ;;  %v3326_v38 = vunpack.c.h.bf16 %v264_v39  ;;  %v410_v13 = vsel %vm349_vm1, %v407_v51, %v409_v31  ;;  %v412_v14 = vsel %vm349_vm1, %v409_v31, %v411_v34  ;;  %p2807_p3 = pnand %p2806_p2, %p2800_p13 }
  0x4e   : > { %2667 = vrot.lane.b32.xlu1 %v2666_v44, %s2862_s12  ;;  %v794_v44 = vrot.slane %v2971_v10, 4  ;;  %v413_v26 = vrot.slane %v3290_v16, 1  ;;  %v414_v28 = vrot.slane %v3299_v27, 1 }
  0x4f   : > { %1339 = vmatpush1.bf16.msra.mxu0 %v2774_v30  ;;  %v416_v30 = vrot.slane %v3302_v29, 1  ;;  %v691_v31 = vsel %vm623_vm0, %v688_v50, %v690_v40  ;;  %v692_v34 = vrot.slane %v3326_v38, 3  ;;  %v2696_v29 = vpack.i.bf16 %v412_v14, %v410_v13 }
  0x50   : > { %2672 = vrot.lane.b32.xlu0 %v2671_v3, %s2862_s12  ;;  %v3328_v3 = vunpack.c.l.bf16 %v268_v42  ;;  %1340 = vmatprep.subr.bf16.mxu0 %v2777_v41  ;;  %v795_v25 = vsel %vm792_vm2, %v793_v54, %v794_v44  ;;  %v797_v39 = vsel %vm792_vm2, %v794_v44, %v796_v55  ;;  %v2691_v42 = vpack.i.bf16 %v686_v21, %v684_v45 }
  0x51   : > { %v964_v51 = vpack.c.bf16 %v797_v39, %v795_v25  ;;  %v798_v54 = vrot.slane %v2975_v12, 4  ;;  %v800_v45 = vrot.slane %v2983_v17, 4  ;;  %v4014_v21 = vmov 0  }
  0x52   : > { %4013 = vst [vmem:[#allocation7_spill] sm:$0xff] %v3328_v3  ;;  %2677 = vrot.lane.b32.xlu1 %v2676_v32, %s2862_s12  ;;  %v689_v32 = vsel %vm623_vm0, %v687_v47, %v688_v50  ;;  %v694_v41 = vrot.slane %v3328_v3, 3  ;;  %v415_v47 = vsel %vm349_vm1, %v413_v26, %v414_v28  ;;  %v417_v50 = vsel %vm349_vm1, %v414_v28, %v416_v30 }
  0x53   : > { %1341 = vmatpush1.bf16.msra.mxu0 %v2780_v33  ;;  %2273 = vmatmul.mubr.msk.bf16.vlgmr.msra.gmra.mrb[0].mxu1 %vm897_vm3, %v964_v51  ;;  %v420_v44 = vrot.slane %v3328_v3, 1  ;;  %v799_v33 = vsel %vm792_vm2, %v796_v55, %v798_v54  ;;  %v801_v13 = vsel %vm792_vm2, %v798_v54, %v800_v45  ;;  %v693_v14 = vsel %vm623_vm0, %v690_v40, %v692_v34 }
  0x54   : > { %2682 = vrot.lane.b32.xlu0 %v2681_v48, %s2862_s12  ;;  %v418_v48 = vrot.slane %v3326_v38, 1  ;;  %1545 = vmatprep.mubr.bf16.mxu1 %v4014_v21  ;;  %v695_v25 = vsel %vm623_vm0, %v692_v34, %v694_v41  ;;  %v2706_v26 = vpack.i.bf16 %v417_v50, %v415_v47  ;;  %v967_v39 = vpack.c.bf16 %v801_v13, %v799_v33 }
  0x55   : > { %v802_v3 = vrot.slane %v2989_v20, 4  ;;  %v803_v55 = vrot.slane %v2985_v18, 4  ;;  %v807_v34 = vrot.slane %v3032_v56, 4  ;;  %v809_v41 = vrot.slane %v3034_v57, 4 }
  0x56   : > { %2687 = vrot.lane.b32.xlu1 %v2686_v49, %s2862_s12  ;;  %v2701_v49 = vpack.i.bf16 %v691_v31, %v689_v32  ;;  %v419_v28 = vsel %vm349_vm1, %v416_v30, %v418_v48  ;;  %v421_v51 = vsel %vm349_vm1, %v418_v48, %v420_v44  ;;  %v2711_v32 = vpack.i.bf16 %v695_v25, %v693_v14 }
  0x57   : > { %v2716_v40 = vpack.i.bf16 %v421_v51, %v419_v28  ;;  %v810_v48 = vsel %vm792_vm2, %v807_v34, %v809_v41  ;;  %v811_v45 = vrot.slane %v3036_v58, 4  ;;  %v812_v47 = vrot.slane %v3042_v63, 4 }
  0x58   : > { %2692 = vrot.lane.b32.xlu0 %v2691_v42, %s2862_s12  ;;  %v805_v42 = vrot.slane %v2987_v19, 4  ;;  %v814_v50 = vrot.slane %v3053_v8, 4  ;;  %v816_v13 = vrot.slane %v3077_v35, 4  ;;  %v818_v14 = vrot.slane %v3079_v36, 4 }
  0x59   : > { %v813_v44 = vsel %vm792_vm2, %v811_v45, %v812_v47  ;;  %v821_v51 = vrot.slane %v3081_v37, 4 }
  0x5a   : > { %2697 = vrot.lane.b32.xlu1 %v2696_v29, %s2862_s12  ;;  %v804_v29 = vsel %vm792_vm2, %v802_v3, %v803_v55  ;;  %v806_v30 = vsel %vm792_vm2, %v803_v55, %v805_v42  ;;  %v808_v54 = vsel %vm792_vm2, %v805_v42, %v807_v34  ;;  %v815_v33 = vsel %vm792_vm2, %v812_v47, %v814_v50 }
  0x5b   : > { %2274 = vmatmul.mubr.msk.bf16.gmra.mrb[4].mxu1 %vm897_vm3, %v967_v39  ;;  %v970_v31 = vpack.c.bf16 %v806_v30, %v804_v29  ;;  %v973_v3 = vpack.c.bf16 %v810_v48, %v808_v54  ;;  %v817_v25 = vsel %vm792_vm2, %v814_v50, %v816_v13  ;;  %v820_v39 = vrot.slane %v3104_v52, 4 }
  0x5c   : > { %2702 = vrot.lane.b32.xlu0 %v2701_v49, %s2862_s12  ;;  %1555 = vmatprep.mubr.bf16.mxu1 %v4014_v21  ;;  %v976_v49 = vpack.c.bf16 %v815_v33, %v813_v44  ;;  %v823_v55 = vrot.slane %v3092_v43, 4  ;;  %v825_v29 = vrot.slane %v3130_v15, 4  ;;  %v827_v30 = vrot.slane %v3134_v22, 4 }
  0x5d   : > { %v822_v42 = vsel %vm792_vm2, %v820_v39, %v821_v51  ;;  %v829_v54 = vrot.slane %v3136_v23, 4  ;;  %v830_v48 = vrot.slane %v3138_v24, 4  ;;  %v519_v50 = vrot.slane %v2969_v9, 2 }
  0x5e   : > { %2707 = vrot.lane.b32.xlu1 %v2706_v26, %s2862_s12  ;;  %v819_v26 = vsel %vm792_vm2, %v816_v13, %v818_v14  ;;  %v828_v34 = vsel %vm792_vm2, %v825_v29, %v827_v30  ;;  %v520_v44 = vrot.slane %v2971_v10, 2  ;;  %v522_v33 = vrot.slane %v2973_v11, 2 }
  0x5f   : > { %v979_v28 = vpack.c.bf16 %v819_v26, %v817_v25  ;;  %v831_v45 = vsel %vm792_vm2, %v829_v54, %v830_v48  ;;  %v526_v13 = vrot.slane %v2983_v17, 2  ;;  %v834_v25 = vrot.slane %v3188_v1, 4 }
  0x60   : > { %2712 = vrot.lane.b32.xlu0 %v2711_v32, %s2862_s12  ;;  %v824_v32 = vsel %vm792_vm2, %v821_v51, %v823_v55  ;;  %v836_v26 = vrot.slane %v3190_v2, 4  ;;  %v521_v39 = vsel %vm518_vm4, %v519_v50, %v520_v44  ;;  %v523_v51 = vsel %vm518_vm4, %v520_v44, %v522_v33 }
  0x61   : > { %v838_v54 = vrot.slane %v3200_v7, 4 }
  0x62   : > { %2717 = vrot.lane.b32.xlu1 %v2716_v40, %s2862_s12  ;;  %v982_v40 = vpack.c.bf16 %v824_v32, %v822_v42 }
  0x63   : > { %2275 = vmatmul.mubr.msk.bf16.gmra.mrb[8].mxu1 %vm897_vm3, %v970_v31  ;;  %v826_v31 = vsel %vm792_vm2, %v823_v55, %v825_v29  ;;  %v837_v29 = vsel %vm792_vm2, %v834_v25, %v836_v26 }
  0x64   : > { %1565 = vmatprep.mubr.bf16.mxu1 %v4014_v21  ;;  %v985_v41 = vpack.c.bf16 %v828_v34, %v826_v31  ;;  %v528_v31 = vrot.slane %v2989_v20, 2  ;;  %v529_v34 = vrot.slane %v2985_v18, 2 }
  0x6b   : > { %2276 = vmatmul.mubr.msk.bf16.gmra.mrb[12].mxu1 %vm897_vm3, %v973_v3  ;;  %v832_v3 = vrot.slane %v3166_v46, 4 }
  0x6c   : > { %1575 = vmatprep.mubr.bf16.mxu1 %v4014_v21 }
  0x6d   : > { %v833_v47 = vsel %vm792_vm2, %v830_v48, %v832_v3  ;;  %v835_v17 = vsel %vm792_vm2, %v832_v3, %v834_v25 }
  0x6e   : > { %v988_v14 = vpack.c.bf16 %v833_v47, %v831_v45  ;;  %v991_v3 = vpack.c.bf16 %v837_v29, %v835_v17 }
  0x73   : > { %2277 = vmatmul.mubr.msk.bf16.gmra.mrb[16].mxu1 %vm897_vm3, %v976_v49  ;;  %v524_v49 = vrot.slane %v2975_v12, 2 }
  0x74   : > { %1585 = vmatprep.mubr.bf16.mxu1 %v4014_v21 }
  0x75   : > { %v525_v55 = vsel %vm518_vm4, %v522_v33, %v524_v49  ;;  %v527_v42 = vsel %vm518_vm4, %v524_v49, %v526_v13  ;;  %v839_v49 = vrot.slane %v3195_v5, 4  ;;  %v841_v13 = vrot.slane %v3197_v6, 4 }
  0x7b   : > { %2278 = vmatmul.mubr.msk.bf16.gmra.mrb[20].mxu1 %vm897_vm3, %v979_v28 }
  0x7c   : > { %1595 = vmatprep.mubr.bf16.mxu1 %v4014_v21 }
  0x83   : > { %2279 = vmatmul.mubr.msk.bf16.gmra.mrb[24].mxu1 %vm897_vm3, %v982_v40 }
  0x84   : > { %1605 = vmatprep.mubr.bf16.mxu1 %v4014_v21 }
  0x8b   : > { %2280 = vmatmul.mubr.msk.bf16.gmra.mrb[28].mxu1 %vm897_vm3, %v985_v41  ;;  %v531_v41 = vrot.slane %v2987_v19, 2 }
  0x8c   : > { %1615 = vmatprep.mubr.bf16.mxu1 %v4014_v21 }
  0x93   : > { %2281 = vmatmul.mubr.msk.bf16.gmra.mrb[32].mxu1 %vm897_vm3, %v988_v14 }
  0x94   : > { %1625 = vmatprep.mubr.bf16.mxu1 %v4014_v21 }
  0x96   : > { %v2563_v28 = vpop.permute.xlu0 %2562 }
  0x97   : > { %v2565_v32 = vunpack.i.h.bf16 %v2563_v28  ;;  %v2564_v40 = vunpack.i.l.bf16 %v2563_v28 }
  0x98   : > { %v2573_v30 = vpop.permute.xlu1 %2572 }
  0x99   : > { %v930_v48 = vsel %vm897_vm3, %v521_v39, %v2564_v40  ;;  %v931_v45 = vsel %vm897_vm3, %v523_v51, %v2565_v32  ;;  %v2575_v47 = vunpack.i.h.bf16 %v2573_v30  ;;  %v2574_v50 = vunpack.i.l.bf16 %v2573_v30 }
  0x9a   : > { %v2568_v44 = vpop.permute.xlu0 %2567  ;;  %v963_v33 = vpack.c.bf16 %v931_v45, %v930_v48  ;;  %v530_v48 = vsel %vm518_vm4, %v528_v31, %v529_v34  ;;  %v532_v45 = vsel %vm518_vm4, %v529_v34, %v531_v41 }
  0x9b   : > { %v2570_v14 = vunpack.i.h.bf16 %v2568_v44  ;;  %v2569_v25 = vunpack.i.l.bf16 %v2568_v44  ;;  %v932_v26 = vsel %vm897_vm3, %v525_v55, %v2574_v50  ;;  %v933_v28 = vsel %vm897_vm3, %v527_v42, %v2575_v47  ;;  %2282 = vmatmul.mubr.msk.bf16.gmra.mrb[36].mxu1 %vm897_vm3, %v991_v3 }
  0x9c   : > { %1342 = vmatprep.mubr.bf16.mxu0 %v963_v33  ;;  %v2578_v7 = vpop.permute.xlu1 %2577  ;;  %v966_v39 = vpack.c.bf16 %v933_v28, %v932_v26  ;;  %1635 = vmatprep.mubr.bf16.mxu1 %v4014_v21  ;;  %v840_v47 = vsel %vm792_vm2, %v838_v54, %v839_v49  ;;  %v533_v3 = vrot.slane %v3032_v56, 2  ;;  %v535_v54 = vrot.slane %v3034_v57, 2 }
  0x9d   : > { %v898_v51 = vsel %vm897_vm3, %v2969_v9, %v2569_v25  ;;  %v899_v32 = vsel %vm897_vm3, %v2971_v10, %v2570_v14  ;;  %v2580_v40 = vunpack.i.h.bf16 %v2578_v7  ;;  %v2579_v17 = vunpack.i.l.bf16 %v2578_v7 }
  0x9e   : > { %v962_v29 = vpack.c.bf16 %v899_v32, %v898_v51  ;;  %v2583_v30 = vpop.permute.xlu0 %2582  ;;  %v842_v9 = vsel %vm792_vm2, %v839_v49, %v841_v13  ;;  %v843_v49 = vrot.slane %v3238_v59, 4  ;;  %v845_v14 = vrot.slane %v3241_v60, 4 }
  0x9f   : > { %v2585_v55 = vunpack.i.h.bf16 %v2583_v30  ;;  %v2584_v42 = vunpack.i.l.bf16 %v2583_v30  ;;  %v900_v10 = vsel %vm897_vm3, %v2973_v11, %v2579_v17  ;;  %v901_v7 = vsel %vm897_vm3, %v2975_v12, %v2580_v40 }
  0xa0   : > { %1343 = vmatmul.mubr.bf16.vlgmr.msra.gmra.mrb[0].mxu0 %v962_v29  ;;  %v2588_v31 = vpop.permute.xlu1 %2587  ;;  %v994_v44 = vpack.c.bf16 %v842_v9, %v840_v47  ;;  %v965_v25 = vpack.c.bf16 %v901_v7, %v900_v10  ;;  %v534_v51 = vsel %vm518_vm4, %v531_v41, %v533_v3  ;;  %v536_v32 = vsel %vm518_vm4, %v533_v3, %v535_v54 }
  0xa1   : > { %1352 = vmatprep.mubr.bf16.mxu0 %v966_v39  ;;  %v934_v34 = vsel %vm897_vm3, %v530_v48, %v2584_v42  ;;  %v935_v50 = vsel %vm897_vm3, %v532_v45, %v2585_v55  ;;  %v2590_v11 = vunpack.i.h.bf16 %v2588_v31  ;;  %v2589_v26 = vunpack.i.l.bf16 %v2588_v31 }
  0xa2   : > { %v2593_v33 = vpop.permute.xlu0 %2592  ;;  %v969_v28 = vpack.c.bf16 %v935_v50, %v934_v34  ;;  %v844_v57 = vsel %vm792_vm2, %v841_v13, %v843_v49  ;;  %v846_v40 = vsel %vm792_vm2, %v843_v49, %v845_v14  ;;  %v537_v30 = vrot.slane %v3036_v58, 2 }
  0xa3   : > { %v2595_v12 = vunpack.i.h.bf16 %v2593_v33  ;;  %v2594_v39 = vunpack.i.l.bf16 %v2593_v33  ;;  %2283 = vmatmul.mubr.msk.bf16.gmra.mrb[40].mxu1 %vm897_vm3, %v994_v44  ;;  %v902_v17 = vsel %vm897_vm3, %v2989_v20, %v2589_v26  ;;  %v903_v29 = vsel %vm897_vm3, %v2985_v18, %v2590_v11 }
  0xa4   : > { %1645 = vmatprep.mubr.bf16.mxu1 %v4014_v21  ;;  %v2598_v48 = vpop.permute.xlu1 %2597  ;;  %v538_v55 = vrot.slane %v3042_v63, 2  ;;  %v997_v13 = vpack.c.bf16 %v846_v40, %v844_v57  ;;  %v540_v47 = vrot.slane %v3053_v8, 2  ;;  %v847_v9 = vrot.slane %v3243_v61, 4 }
  0xa5   : > { %v936_v41 = vsel %vm897_vm3, %v534_v51, %v2594_v39  ;;  %v937_v45 = vsel %vm897_vm3, %v536_v32, %v2595_v12  ;;  %v848_v20 = vrot.slane %v3245_v62, 4  ;;  %v850_v10 = vrot.slane %v3247_v0, 4 }
  0xa6   : > { %v2603_v42 = vpop.permute.xlu0 %2602  ;;  %v968_v18 = vpack.c.bf16 %v903_v29, %v902_v17  ;;  %v2600_v7 = vunpack.i.h.bf16 %v2598_v48  ;;  %v2599_v31 = vunpack.i.l.bf16 %v2598_v48  ;;  %v972_v34 = vpack.c.bf16 %v937_v45, %v936_v41 }
  0xa7   : > { %v2605_v50 = vunpack.i.h.bf16 %v2603_v42  ;;  %v2604_v44 = vunpack.i.l.bf16 %v2603_v42  ;;  %v539_v33 = vsel %vm518_vm4, %v537_v30, %v538_v55  ;;  %v541_v3 = vsel %vm518_vm4, %v538_v55, %v540_v47 }
  0xa8   : > { %1353 = vmatmul.mubr.bf16.gmra.mrb[4].mxu0 %v965_v25  ;;  %v849_v54 = vsel %vm792_vm2, %v847_v9, %v848_v20  ;;  %v851_v49 = vsel %vm792_vm2, %v848_v20, %v850_v10  ;;  %v904_v14 = vsel %vm897_vm3, %v2987_v19, %v2599_v31  ;;  %v905_v25 = vsel %vm897_vm3, %v3032_v56, %v2600_v7  ;;  %v2608_v11 = vpop.permute.xlu1 %2607 }
  0xa9   : > { %1362 = vmatprep.mubr.bf16.mxu0 %v969_v28  ;;  %v938_v26 = vsel %vm897_vm3, %v539_v33, %v2604_v44  ;;  %v939_v28 = vsel %vm897_vm3, %v541_v3, %v2605_v50  ;;  %v1000_v12 = vpack.c.bf16 %v851_v49, %v849_v54  ;;  %v542_v51 = vrot.slane %v3077_v35, 2  ;;  %v4015_v44 = vld [vmem:[#allocation6_spill] sm:$0xff] }
  0xaa   : > { %v2613_v39 = vpop.permute.xlu0 %2612  ;;  %v544_v32 = vrot.slane %v3079_v36, 2  ;;  %v852_v57 = vrot.slane %v3280_v53, 4  ;;  %v854_v40 = vrot.slane %v3282_v4, 4  ;;  %v971_v17 = vpack.c.bf16 %v905_v25, %v904_v14 }
  0xab   : > { %2284 = vmatmul.mubr.msk.bf16.gmra.mrb[44].mxu1 %vm897_vm3, %v997_v13  ;;  %v2610_v19 = vunpack.i.h.bf16 %v2608_v11  ;;  %v2609_v29 = vunpack.i.l.bf16 %v2608_v11  ;;  %v975_v30 = vpack.c.bf16 %v939_v28, %v938_v26  ;;  %v2615_v56 = vunpack.i.h.bf16 %v2613_v39 }
  0xac   : > { %1655 = vmatprep.mubr.bf16.mxu1 %v4014_v21  ;;  %v2614_v48 = vunpack.i.l.bf16 %v2613_v39  ;;  %v543_v41 = vsel %vm518_vm4, %v540_v47, %v542_v51  ;;  %v545_v45 = vsel %vm518_vm4, %v542_v51, %v544_v32  ;;  %v853_v36 = vsel %vm792_vm2, %v850_v10, %v852_v57  ;;  %v2618_v20 = vpop.permute.xlu1 %2617 }
  0xad   : > { %v855_v55 = vsel %vm792_vm2, %v852_v57, %v854_v40  ;;  %v906_v13 = vsel %vm897_vm3, %v3036_v58, %v2609_v29  ;;  %v907_v42 = vsel %vm897_vm3, %v3042_v63, %v2610_v19  ;;  %v546_v9 = vrot.slane %v3104_v52, 2 }
  0xae   : > { %v940_v47 = vsel %vm897_vm3, %v543_v41, %v2614_v48  ;;  %v547_v7 = vrot.slane %v3081_v37, 2  ;;  %v1003_v10 = vpack.c.bf16 %v855_v55, %v853_v36  ;;  %v2623_v31 = vpop.permute.xlu0 %2622  ;;  %v856_v50 = vrot.slane %v3290_v16, 4  ;;  %v4016_v48 = vld [vmem:[#allocation7_spill] sm:$0xff] }
  0xaf   : > { %v857_v58 = vrot.slane %v3299_v27, 4  ;;  %v859_v33 = vrot.slane %v4015_v44, 4  ;;  %v974_v63 = vpack.c.bf16 %v907_v42, %v906_v13  ;;  %v2620_v3 = vunpack.i.h.bf16 %v2618_v20 }
  0xb0   : > { %1363 = vmatmul.mubr.bf16.gmra.mrb[8].mxu0 %v968_v18  ;;  %v941_v18 = vsel %vm897_vm3, %v545_v45, %v2615_v56  ;;  %v2619_v54 = vunpack.i.l.bf16 %v2618_v20  ;;  %v2625_v14 = vunpack.i.h.bf16 %v2623_v31  ;;  %v2624_v25 = vunpack.i.l.bf16 %v2623_v31  ;;  %v2628_v32 = vpop.permute.xlu1 %2627 }
  0xb1   : > { %1372 = vmatprep.mubr.bf16.mxu0 %v972_v34  ;;  %v549_v34 = vrot.slane %v3092_v43, 2  ;;  %v978_v49 = vpack.c.bf16 %v941_v18, %v940_v47  ;;  %v548_v11 = vsel %vm518_vm4, %v546_v9, %v547_v7  ;;  %v858_v28 = vsel %vm792_vm2, %v856_v50, %v857_v58 }
  0xb2   : > { %v908_v39 = vsel %vm897_vm3, %v3053_v8, %v2619_v54  ;;  %v909_v51 = vsel %vm897_vm3, %v3077_v35, %v2620_v3  ;;  %v942_v57 = vsel %vm897_vm3, %v548_v11, %v2624_v25  ;;  %v2633_v19 = vpop.permute.xlu0 %2632  ;;  %v551_v29 = vrot.slane %v3130_v15, 2 }
  0xb3   : > { %2285 = vmatmul.mubr.msk.bf16.gmra.mrb[48].mxu1 %vm897_vm3, %v1000_v12  ;;  %v550_v26 = vsel %vm518_vm4, %v547_v7, %v549_v34  ;;  %v860_v12 = vsel %vm792_vm2, %v857_v58, %v859_v33  ;;  %v861_v56 = vrot.slane %v3326_v38, 4  ;;  %v863_v41 = vrot.slane %v4016_v48, 4 }
  0xb4   : > { %1665 = vmatprep.mubr.bf16.mxu1 %v4014_v21  ;;  %v943_v40 = vsel %vm897_vm3, %v550_v26, %v2625_v14  ;;  %v977_v45 = vpack.c.bf16 %v909_v51, %v908_v39  ;;  %v2630_v8 = vunpack.i.h.bf16 %v2628_v32  ;;  %v2629_v36 = vunpack.i.l.bf16 %v2628_v32  ;;  %v2638_v7 = vpop.permute.xlu1 %2637 }
  0xb5   : > { %v981_v55 = vpack.c.bf16 %v943_v40, %v942_v57  ;;  %v2635_v35 = vunpack.i.h.bf16 %v2633_v19  ;;  %v2634_v13 = vunpack.i.l.bf16 %v2633_v19  ;;  %v552_v42 = vsel %vm518_vm4, %v549_v34, %v551_v29 }
  0xb6   : > { %v864_v20 = vsel %vm792_vm2, %v861_v56, %v863_v41  ;;  %v910_v47 = vsel %vm897_vm3, %v3104_v52, %v2629_v36  ;;  %v911_v18 = vsel %vm897_vm3, %v3081_v37, %v2630_v8  ;;  %v2643_v50 = vpop.permute.xlu0 %2642  ;;  %v556_v58 = vrot.slane %v3138_v24, 2 }
  0xb7   : > { %v2640_v3 = vunpack.i.h.bf16 %v2638_v7  ;;  %v2639_v54 = vunpack.i.l.bf16 %v2638_v7  ;;  %v2644_v14 = vunpack.i.l.bf16 %v2643_v50  ;;  %v560_v32 = vrot.slane %v3188_v1, 2 }
  0xb8   : > { %1373 = vmatmul.mubr.bf16.gmra.mrb[12].mxu0 %v971_v17  ;;  %v1006_v17 = vpack.c.bf16 %v860_v12, %v858_v28  ;;  %v2648_v28 = vpop.permute.xlu1 %2647  ;;  %v562_v57 = vrot.slane %v3190_v2, 2 }
  0xb9   : > { %1382 = vmatprep.mubr.bf16.mxu0 %v975_v30  ;;  %v553_v30 = vrot.slane %v3134_v22, 2  ;;  %v862_v22 = vsel %vm792_vm2, %v859_v33, %v861_v56  ;;  %v558_v33 = vrot.slane %v3166_v46, 2  ;;  %v912_v11 = vsel %vm897_vm3, %v3092_v43, %v2639_v54 }
  0xba   : > { %v1009_v34 = vpack.c.bf16 %v864_v20, %v862_v22  ;;  %v913_v26 = vsel %vm897_vm3, %v3130_v15, %v2640_v3  ;;  %v2653_v51 = vpop.permute.xlu0 %2652  ;;  %v2649_v19 = vunpack.i.l.bf16 %v2648_v28  ;;  %v563_v15 = vsel %vm518_vm4, %v560_v32, %v562_v57 }
  0xbb   : > { %2286 = vmatmul.mubr.msk.bf16.gmra.mrb[52].mxu1 %vm897_vm3, %v1003_v10  ;;  %v554_v9 = vsel %vm518_vm4, %v551_v29, %v553_v30  ;;  %v944_v10 = vsel %vm897_vm3, %v552_v42, %v2634_v13  ;;  %v559_v25 = vsel %vm518_vm4, %v556_v58, %v558_v33  ;;  %v983_v40 = vpack.c.bf16 %v913_v26, %v912_v11 }
  0xbc   : > { %1675 = vmatprep.mubr.bf16.mxu1 %v4014_v21  ;;  %v945_v31 = vsel %vm897_vm3, %v554_v9, %v2635_v35  ;;  %v2655_v30 = vunpack.i.h.bf16 %v2653_v51  ;;  %v2654_v56 = vunpack.i.l.bf16 %v2653_v51  ;;  %v561_v43 = vsel %vm518_vm4, %v558_v33, %v560_v32  ;;  %v2658_v8 = vpop.permute.xlu1 %2657  ;;  %v4017_v35 = vld [vmem:[#allocation5_spill] sm:$0xff] }
  0xbd   : > { %v984_v52 = vpack.c.bf16 %v945_v31, %v944_v10  ;;  %v914_v41 = vsel %vm897_vm3, %v3136_v23, %v2649_v19  ;;  %v564_v13 = vrot.slane %v4017_v35, 2  ;;  %v565_v42 = vrot.slane %v3195_v5, 2 }
  0xbe   : > { %v948_v2 = vsel %vm897_vm3, %v561_v43, %v2654_v56  ;;  %v949_v36 = vsel %vm897_vm3, %v563_v15, %v2655_v30  ;;  %v567_v9 = vrot.slane %v3197_v6, 2  ;;  %v2660_v20 = vunpack.i.h.bf16 %v2658_v8 }
  0xbf   : > { %v571_v3 = vrot.slane %v3241_v60, 2  ;;  %v573_v51 = vrot.slane %v3243_v61, 2  ;;  %v574_v32 = vrot.slane %v3245_v62, 2  ;;  %v576_v57 = vrot.slane %v3247_v0, 2 }
  0xc0   : > { %1383 = vmatmul.mubr.bf16.gmra.mrb[16].mxu0 %v974_v63  ;;  %v980_v63 = vpack.c.bf16 %v911_v18, %v910_v47  ;;  %v2659_v47 = vunpack.i.l.bf16 %v2658_v8  ;;  %v990_v18 = vpack.c.bf16 %v949_v36, %v948_v2  ;;  %v568_v10 = vsel %vm518_vm4, %v565_v42, %v567_v9 }
  0xc1   : > { %1392 = vmatprep.mubr.bf16.mxu0 %v978_v49  ;;  %v2645_v49 = vunpack.i.h.bf16 %v2643_v50  ;;  %v2668_v50 = vpop.permute.xlu1 %2667  ;;  %v577_v43 = vsel %vm518_vm4, %v574_v32, %v576_v57 }
  0xc2   : > { %v916_v31 = vsel %vm897_vm3, %v3166_v46, %v2659_v47 }
  0xc3   : > { %2287 = vmatmul.mubr.msk.bf16.gmra.mrb[56].mxu1 %vm897_vm3, %v1006_v17  ;;  %v947_v39 = vsel %vm897_vm3, %v559_v25, %v2645_v49  ;;  %v2650_v17 = vunpack.i.h.bf16 %v2648_v28  ;;  %v2669_v49 = vunpack.i.l.bf16 %v2668_v50 }
  0xc4   : > { %1685 = vmatprep.mubr.bf16.mxu1 %v4014_v21  ;;  %v555_v21 = vrot.slane %v3136_v23, 2 }
  0xc5   : > { %v918_v11 = vsel %vm897_vm3, %v4017_v35, %v2669_v49  ;;  %v2678_v28 = vpop.permute.xlu1 %2677  ;;  %v580_v35 = vrot.slane %v3282_v4, 2 }
  0xc6   : > { %v557_v37 = vsel %vm518_vm4, %v555_v21, %v556_v58  ;;  %v2679_v19 = vunpack.i.l.bf16 %v2678_v28 }
  0xc7   : > { %v946_v12 = vsel %vm897_vm3, %v557_v37, %v2644_v14 }
  0xc8   : > { %1393 = vmatmul.mubr.bf16.gmra.mrb[20].mxu0 %v977_v45  ;;  %v987_v29 = vpack.c.bf16 %v947_v39, %v946_v12  ;;  %v915_v45 = vsel %vm897_vm3, %v3138_v24, %v2650_v17  ;;  %v566_v24 = vsel %vm518_vm4, %v564_v13, %v565_v42  ;;  %v2680_v17 = vunpack.i.h.bf16 %v2678_v28 }
  0xc9   : > { %1402 = vmatprep.mubr.bf16.mxu0 %v981_v55  ;;  %v2663_v55 = vpop.permute.xlu0 %2662  ;;  %v986_v22 = vpack.c.bf16 %v915_v45, %v914_v41  ;;  %v920_v15 = vsel %vm897_vm3, %v3197_v6, %v2679_v19  ;;  %v2688_v45 = vpop.permute.xlu1 %2687 }
  0xca   : > { %v2665_v23 = vunpack.i.h.bf16 %v2663_v55  ;;  %v2664_v7 = vunpack.i.l.bf16 %v2663_v55  ;;  %v921_v41 = vsel %vm897_vm3, %v3238_v59, %v2680_v17  ;;  %v578_v55 = vrot.slane %v3280_v53, 2 }
  0xcb   : > { %2288 = vmatmul.mubr.msk.bf16.gmra.mrb[60].mxu1 %vm897_vm3, %v1009_v34  ;;  %v917_v34 = vsel %vm897_vm3, %v3188_v1, %v2660_v20  ;;  %v995_v13 = vpack.c.bf16 %v921_v41, %v920_v15  ;;  %v2690_v42 = vunpack.i.h.bf16 %v2688_v45  ;;  %v2782_v15 = vld [vmem:[%s3998_s3] sm:$0xff]   ;;  %v2783_v41 = vld [vmem:[%s3998_s3 + $0x48] sm:$0xff]  }
  0xcc   : > { %v950_v21 = vsel %vm897_vm3, %v566_v24, %v2664_v7  ;;  %v951_v58 = vsel %vm897_vm3, %v568_v10, %v2665_v23  ;;  %v989_v54 = vpack.c.bf16 %v917_v34, %v916_v31  ;;  %v579_v6 = vsel %vm518_vm4, %v576_v57, %v578_v55 }
  0xcd   : > { %v2673_v33 = vpop.permute.xlu0 %2672  ;;  %v993_v14 = vpack.c.bf16 %v951_v58, %v950_v21  ;;  %v923_v23 = vsel %vm897_vm3, %v3245_v62, %v2690_v42  ;;  %v2698_v7 = vpop.permute.xlu1 %2697  ;;  %v582_v31 = vrot.slane %v3290_v16, 2  ;;  %v583_v34 = vrot.slane %v3299_v27, 2  ;;  %v2785_v42 = vld [vmem:[%s3998_s3 + $0x50] sm:$0xff]  }
  0xce   : > { %v2675_v37 = vunpack.i.h.bf16 %v2673_v33  ;;  %v2674_v25 = vunpack.i.l.bf16 %v2673_v33  ;;  %v2700_v58 = vunpack.i.h.bf16 %v2698_v7  ;;  %v2699_v33 = vunpack.i.l.bf16 %v2698_v7 }
  0xcf   : > { %v584_v62 = vsel %vm518_vm4, %v582_v31, %v583_v34 }
  0xd0   : > { %1403 = vmatmul.mubr.bf16.gmra.mrb[24].mxu0 %v980_v63  ;;  %v569_v63 = vrot.slane %v3238_v59, 2  ;;  %v581_v59 = vsel %vm518_vm4, %v578_v55, %v580_v35  ;;  %v925_v49 = vsel %vm897_vm3, %v3280_v53, %v2700_v58 }
  0xd1   : > { %1412 = vmatprep.mubr.bf16.mxu0 %v984_v52  ;;  %v2670_v52 = vunpack.i.h.bf16 %v2668_v50  ;;  %v2683_v39 = vpop.permute.xlu0 %2682  ;;  %v585_v50 = vrot.slane %v4015_v44, 2 }
  0xd2   : > { %v570_v46 = vsel %vm518_vm4, %v567_v9, %v569_v63  ;;  %v572_v1 = vsel %vm518_vm4, %v569_v63, %v571_v3  ;;  %v2685_v30 = vunpack.i.h.bf16 %v2683_v39  ;;  %v2684_v56 = vunpack.i.l.bf16 %v2683_v39 }
  0xd3   : > { %v919_v26 = vsel %vm897_vm3, %v3195_v5, %v2670_v52  ;;  %v952_v60 = vsel %vm897_vm3, %v570_v46, %v2674_v25  ;;  %v953_v12 = vsel %vm897_vm3, %v572_v1, %v2675_v37  ;;  %v575_v5 = vsel %vm518_vm4, %v573_v51, %v574_v32 }
  0xd4   : > { %v954_v8 = vsel %vm897_vm3, %v575_v5, %v2684_v56  ;;  %v955_v2 = vsel %vm897_vm3, %v577_v43, %v2685_v30  ;;  %v2689_v9 = vunpack.i.l.bf16 %v2688_v45  ;;  %v924_v52 = vsel %vm897_vm3, %v3247_v0, %v2699_v33 }
  0xd5   : > { %v2693_v36 = vpop.permute.xlu0 %2692  ;;  %v587_v1 = vrot.slane %v3326_v38, 2 }
  0xd6   : > { %v2695_v20 = vunpack.i.h.bf16 %v2693_v36  ;;  %v2694_v47 = vunpack.i.l.bf16 %v2693_v36 }
  0xd7   : > { %v588_v0 = vsel %vm518_vm4, %v585_v50, %v587_v1 }
  0xd8   : > { %1413 = vmatmul.mubr.bf16.gmra.mrb[28].mxu0 %v983_v40  ;;  %v992_v40 = vpack.c.bf16 %v919_v26, %v918_v11  ;;  %v956_v4 = vsel %vm897_vm3, %v579_v6, %v2694_v47  ;;  %v957_v24 = vsel %vm897_vm3, %v581_v59, %v2695_v20  ;;  %v589_v11 = vrot.slane %v4016_v48, 2 }
  0xd9   : > { %1422 = vmatprep.mubr.bf16.mxu0 %v987_v29  ;;  %v996_v29 = vpack.c.bf16 %v953_v12, %v952_v60  ;;  %v2703_v10 = vpop.permute.xlu0 %2702  ;;  %v1002_v63 = vpack.c.bf16 %v957_v24, %v956_v4  ;;  %v1001_v26 = vpack.c.bf16 %v925_v49, %v924_v52  ;;  %v2787_v4 = vld [vmem:[%s3998_s3 + $0x58] sm:$0xff]  }
  0xda   : > { %v2704_v3 = vunpack.i.l.bf16 %v2703_v10  ;;  %v590_v53 = vsel %vm518_vm4, %v587_v1, %v589_v11  ;;  %v2788_v24 = vld [vmem:[%s3998_s3 + $0x18] sm:$0xff]   ;;  %v2791_v11 = vld [vmem:[%s3998_s3 + $0x68] sm:$0xff]  }
  0xdc   : > { %v958_v37 = vsel %vm897_vm3, %v584_v62, %v2704_v3  ;;  %v2790_v3 = vld [vmem:[%s3998_s3 + $0x20] sm:$0xff]  }
  0xdd   : > { %v2713_v46 = vpop.permute.xlu0 %2712 }
  0xde   : > { %v2715_v39 = vunpack.i.h.bf16 %v2713_v46  ;;  %v2714_v51 = vunpack.i.l.bf16 %v2713_v46  ;;  %v1052_v46 = vlaneseq }
  0xe0   : > { %1423 = vmatmul.mubr.bf16.gmra.mrb[32].mxu0 %v986_v22  ;;  %v999_v22 = vpack.c.bf16 %v955_v2, %v954_v8  ;;  %v960_v48 = vsel %vm897_vm3, %v588_v0, %v2714_v51  ;;  %v961_v17 = vsel %vm897_vm3, %v590_v53, %v2715_v39  ;;  %v1050_v53 = vld [vmem:[%s3997_s2] sm:$0x3] }
  0xe1   : > { %1432 = vmatprep.mubr.bf16.mxu0 %v990_v18  ;;  %v922_v18 = vsel %vm897_vm3, %v3243_v61, %v2689_v9  ;;  %v2705_v61 = vunpack.i.h.bf16 %v2703_v10  ;;  %v1008_v56 = vpack.c.bf16 %v961_v17, %v960_v48  ;;  %v2786_v9 = vld [vmem:[%s3998_s3 + $0x10] sm:$0xff]  }
  0xe2   : > { %v998_v21 = vpack.c.bf16 %v923_v23, %v922_v18 }
  0xe8   : > { %1433 = vmatmul.mubr.bf16.gmra.mrb[36].mxu0 %v989_v54  ;;  %v586_v54 = vsel %vm518_vm4, %v583_v34, %v585_v50 }
  0xe9   : > { %1442 = vmatprep.mubr.bf16.mxu0 %v993_v14  ;;  %v2708_v14 = vpop.permute.xlu1 %2707  ;;  %v959_v25 = vsel %vm897_vm3, %v586_v54, %v2705_v61  ;;  %v2789_v61 = vld [vmem:[%s3998_s3 + $0x60] sm:$0xff]  }
  0xea   : > { %v2710_v28 = vunpack.i.h.bf16 %v2708_v14  ;;  %v2709_v60 = vunpack.i.l.bf16 %v2708_v14  ;;  %v1005_v12 = vpack.c.bf16 %v959_v25, %v958_v37 }
  0xec   : > { %v926_v32 = vsel %vm897_vm3, %v3290_v16, %v2709_v60  ;;  %v927_v57 = vsel %vm897_vm3, %v3299_v27, %v2710_v28  ;;  %v2781_v27 = vld [vmem:[%s3998_s3 + $0x40] sm:$0xff]   ;;  %v1053_v28 = vshrl.u32 %v1052_v46, 7 }
  0xed   : > { %v1004_v19 = vpack.c.bf16 %v927_v57, %v926_v32  ;;  %2369 = vmatprep.subr.bf16.mxu1 %v2781_v27 }
  0xee   : > { %2370 = vmatpush3.bf16.msra.mxu1 %v2782_v15  ;;  %v1054_v51 = vsub.s32 0, %v1053_v28  ;;  %v1058_v32 = vsub.s32 1, %v1053_v28 }
  0xef   : > { %2371 = vmatprep.subr.bf16.mxu1 %v2783_v41 }
  0xf0   : > { %1443 = vmatmul.mubr.bf16.gmra.mrb[40].mxu0 %v992_v40  ;;  %v2718_v40 = vpop.permute.xlu1 %2717  ;;  %v3735_v57 = vrot.slane %v1050_v53, %v1054_v51 }
  0xf1   : > { %1452 = vmatprep.mubr.bf16.mxu0 %v996_v29  ;;  %v2720_v29 = vunpack.i.h.bf16 %v2718_v40  ;;  %v2719_v30 = vunpack.i.l.bf16 %v2718_v40  ;;  %v3737_v40 = vrot.slane %v1050_v53, %v1058_v32 }
  0xf3   : > { %v928_v5 = vsel %vm897_vm3, %v4015_v44, %v2719_v30  ;;  %v929_v16 = vsel %vm897_vm3, %v3326_v38, %v2720_v29  ;;  %v2784_v38 = vld [vmem:[%s3998_s3 + $0x8] sm:$0xff]  }
  0xf4   : > { %v1007_v43 = vpack.c.bf16 %v929_v16, %v928_v5  ;;  %2372 = vmatpush3.bf16.msra.mxu1 %v2784_v38  ;;  %v2793_v16 = vld [vmem:[%s3998_s3 + $0x70] sm:$0xff]  }
  0xf5   : > { %2373 = vmatprep.subr.bf16.mxu1 %v2785_v42 }
  0xf8   : > { %1453 = vmatmul.mubr.bf16.gmra.mrb[44].mxu0 %v995_v13  ;;  %2374 = vmatpush3.bf16.msra.mxu1 %v2786_v9 }
  0xf9   : > { %1462 = vmatprep.mubr.bf16.mxu0 %v999_v22  ;;  %2375 = vmatprep.subr.bf16.mxu1 %v2787_v4 }
  0xfc   : > { %2376 = vmatpush3.bf16.msra.mxu1 %v2788_v24 }
  0xfd   : > { %2377 = vmatprep.subr.bf16.mxu1 %v2789_v61 }
 0x100   : > { %1463 = vmatmul.mubr.bf16.gmra.mrb[48].mxu0 %v998_v21  ;;  %2378 = vmatpush3.bf16.msra.mxu1 %v2790_v3 }
 0x101   : > { %1472 = vmatprep.mubr.bf16.mxu0 %v1002_v63  ;;  %2379 = vmatprep.subr.bf16.mxu1 %v2791_v11 }
 0x108   : > { %1473 = vmatmul.mubr.bf16.gmra.mrb[52].mxu0 %v1001_v26  ;;  %v2792_v26 = vld [vmem:[%s3998_s3 + $0x28] sm:$0xff]  }
 0x109   : > { %1482 = vmatprep.mubr.bf16.mxu0 %v1005_v12  ;;  %2380 = vmatpush3.bf16.msra.mxu1 %v2792_v26 }
 0x10a   : > { %2381 = vmatprep.subr.bf16.mxu1 %v2793_v16 }
 0x110   : > { %1483 = vmatmul.mubr.bf16.gmra.mrb[56].mxu0 %v1004_v19 }
 0x111   : > { %1492 = vmatprep.mubr.bf16.mxu0 %v1008_v56 }
 0x118   : > { %1493 = vmatmul.mubr.bf16.gmra.mrb[60].mxu0 %v1007_v43  ;;  %v2794_v43 = vld [vmem:[%s3998_s3 + $0x30] sm:$0xff]  }
 0x119   : > { %2382 = vmatpush3.bf16.msra.mxu1 %v2794_v43 }
 0x126   : > { %v3636_v44 = vpop.f32.mrb[0].mxu1 }
 0x127   : > { %v3638_v45 = vpop.f32.mrb[1].mxu1 }
 0x128   : > { %v3640_v8 = vpop.f32.mrb[2].mxu1 }
 0x129   : > { %v3642_v2 = vpop.f32.mrb[3].mxu1 }
 0x12e   : > { %v3644_v36 = vpop.f32.mrb[4].mxu1 }
 0x12f   : > { %v3646_v55 = vpop.f32.mrb[5].mxu1 }
 0x130   : > { %v3648_v35 = vpop.f32.mrb[6].mxu1 }
 0x131   : > { %v3650_v13 = vpop.f32.mrb[7].mxu1 }
 0x136   : > { %v3658_v22 = vpop.f32.mrb[8].mxu1 }
 0x137   : > { %v3660_v20 = vpop.f32.mrb[9].mxu1 }
 0x138   : > { %v3662_v47 = vpop.f32.mrb[10].mxu1 }
 0x139   : > { %v3664_v6 = vpop.f32.mrb[11].mxu1 }
 0x13e   : > { %v3666_v59 = vpop.f32.mrb[12].mxu1 }
 0x13f   : > { %v3668_v18 = vpop.f32.mrb[13].mxu1 }
 0x140   : > { %v3670_v23 = vpop.f32.mrb[14].mxu1 }
 0x141   : > { %v3672_v7 = vpop.f32.mrb[15].mxu1 }
 0x146   : > { %v3680_v10 = vpop.f32.mrb[16].mxu1 }
 0x147   : > { %v3682_v31 = vpop.f32.mrb[17].mxu1 }
 0x148   : > { %v3684_v34 = vpop.f32.mrb[18].mxu1 }
 0x149   : > { %v3686_v50 = vpop.f32.mrb[19].mxu1 }
 0x14e   : > { %v3688_v21 = vpop.f32.mrb[20].mxu1 }
 0x14f   : > { %v3690_v58 = vpop.f32.mrb[21].mxu1 }
 0x150   : > { %v3692_v33 = vpop.f32.mrb[22].mxu1 }
 0x151   : > { %v3694_v63 = vpop.f32.mrb[23].mxu1 }
 0x156   : > { %v3702_v62 = vpop.f32.mrb[24].mxu1 }
 0x157   : > { %v3704_v54 = vpop.f32.mrb[25].mxu1 }
 0x158   : > { %v3706_v52 = vpop.f32.mrb[26].mxu1 }
 0x159   : > { %v3708_v49 = vpop.f32.mrb[27].mxu1 }
 0x15e   : > { %v3710_v14 = vpop.f32.mrb[28].mxu1 }
 0x15f   : > { %v3712_v37 = vpop.f32.mrb[29].mxu1 }
 0x160   : > { %v3714_v25 = vpop.f32.mrb[30].mxu1 }
 0x161   : > { %v3716_v1 = vpop.f32.mrb[31].mxu1 }
 0x166   : > { %v3724_v60 = vpop.f32.mrb[32].mxu1 }
 0x167   : > { %v3726_v12 = vpop.f32.mrb[33].mxu1 }
 0x168   : > { %v3728_v39 = vpop.f32.mrb[34].mxu1 }
 0x169   : > { %v3730_v0 = vpop.f32.mrb[35].mxu1 }
 0x16e   : > { %v3739_v48 = vpop.f32.mrb[36].mxu1 }
 0x16f   : > { %v3741_v17 = vpop.f32.mrb[37].mxu1 }
 0x170   : > { %v3743_v29 = vpop.f32.mrb[38].mxu1 }
 0x171   : > { %v3746_v5 = vpop.f32.mrb[39].mxu1 }
 0x173   : > { %v1344_v19 = vpop.f32.mrb[0].mxu0 }
 0x174   : > { %v1345_v30 = vadd.f32 %v1344_v19, %v3735_v57  ;;  %v1346_v56 = vpop.f32.mrb[1].mxu0 }
 0x175   : > { %v1347_v27 = vadd.f32 %v1346_v56, %v3737_v40  ;;  %v1348_v15 = vpop.f32.mrb[2].mxu0 }
 0x176   : > { %v1538_v41 = vadd.f32 %v3636_v44, %v1345_v30  ;;  %v1349_v38 = vadd.f32 %v1348_v15, %v3735_v57  ;;  %v1350_v42 = vpop.f32.mrb[3].mxu0  ;;  %v3761_v3 = vpop.f32.mrb[40].mxu1 }
 0x177   : > { %v1540_v9 = vadd.f32 %v3638_v45, %v1347_v27  ;;  %v1351_v4 = vadd.f32 %v1350_v42, %v3737_v40  ;;  %v3763_v26 = vpop.f32.mrb[41].mxu1 }
 0x178   : > { %v1542_v24 = vadd.f32 %v3640_v8, %v1349_v38  ;;  %v1696_v46 = vmax.f32 %v1538_v41, 0.0  ;;  %v3765_v53 = vpop.f32.mrb[42].mxu1 }
 0x179   : > { %v1544_v61 = vadd.f32 %v3642_v2, %v1351_v4  ;;  %v1697_v44 = vmax.f32 %v1540_v9, 0.0  ;;  %v3768_v30 = vpop.f32.mrb[43].mxu1 }
 0x17a   : > { %v1698_v11 = vmax.f32 %v1542_v24, 0.0 }
 0x17b   : > { %v1699_v28 = vmax.f32 %v1544_v61, 0.0  ;;  %v1354_v51 = vpop.f32.mrb[4].mxu0 }
 0x17c   : > { %v1760_v32 = vmax.f32 %v1696_v46, %v1698_v11  ;;  %v1355_v45 = vadd.f32 %v1354_v51, %v3735_v57  ;;  %v1356_v19 = vpop.f32.mrb[5].mxu0 }
 0x17d   : > { %v1769_v8 = vmax.f32 %v1697_v44, %v1699_v28  ;;  %v1357_v2 = vadd.f32 %v1356_v19, %v3737_v40  ;;  %v1358_v56 = vpop.f32.mrb[6].mxu0 }
 0x17e   : > { %v1548_v16 = vadd.f32 %v3644_v36, %v1355_v45  ;;  %v1359_v43 = vadd.f32 %v1358_v56, %v3735_v57  ;;  %v1360_v27 = vpop.f32.mrb[7].mxu0  ;;  %v3777_v24 = vpop.f32.mrb[44].mxu1 }
 0x17f   : > { %v1550_v15 = vadd.f32 %v3646_v55, %v1357_v2  ;;  %v1361_v41 = vadd.f32 %v1360_v27, %v3737_v40  ;;  %v3779_v11 = vpop.f32.mrb[45].mxu1 }
 0x180   : > { %v1700_v38 = vmax.f32 %v1548_v16, 0.0  ;;  %v1552_v42 = vadd.f32 %v3648_v35, %v1359_v43  ;;  %v3781_v51 = vpop.f32.mrb[46].mxu1  ;;  %v2795_v35 = vld [vmem:[%s3998_s3 + $0x78] sm:$0xff]  }
 0x181   : > { %v1701_v9 = vmax.f32 %v1550_v15, 0.0  ;;  %v1554_v4 = vadd.f32 %v3650_v13, %v1361_v41  ;;  %v3784_v2 = vpop.f32.mrb[47].mxu1  ;;  %v2796_v13 = vld [vmem:[%s3998_s3 + $0x38] sm:$0xff]   ;;  %2383 = vmatprep.subr.bf16.mxu1 %v2795_v35 }
 0x182   : > { %v1761_v61 = vmax.f32 %v1760_v32, %v1700_v38  ;;  %v1702_v46 = vmax.f32 %v1552_v42, 0.0  ;;  %2384 = vmatpush3.bf16.msra.mxu1 %v2796_v13 }
 0x183   : > { %v1770_v36 = vmax.f32 %v1769_v8, %v1701_v9  ;;  %v1703_v44 = vmax.f32 %v1554_v4, 0.0  ;;  %v1364_v28 = vpop.f32.mrb[8].mxu0 }
 0x184   : > { %v1762_v55 = vmax.f32 %v1761_v61, %v1702_v46  ;;  %v1365_v45 = vadd.f32 %v1364_v28, %v3735_v57  ;;  %v1366_v19 = vpop.f32.mrb[9].mxu0 }
 0x185   : > { %v1771_v32 = vmax.f32 %v1770_v36, %v1703_v44  ;;  %v1367_v8 = vadd.f32 %v1366_v19, %v3737_v40  ;;  %v1368_v56 = vpop.f32.mrb[10].mxu0 }
 0x186   : > { %v1558_v16 = vadd.f32 %v3658_v22, %v1365_v45  ;;  %v1369_v43 = vadd.f32 %v1368_v56, %v3735_v57  ;;  %v1370_v27 = vpop.f32.mrb[11].mxu0  ;;  %v1763_v38 = vrot.slane %v1762_v55, 4  ;;  %v3799_v61 = vpop.f32.mrb[48].mxu1 }
 0x187   : > { %v1560_v15 = vadd.f32 %v3660_v20, %v1367_v8  ;;  %v1371_v41 = vadd.f32 %v1370_v27, %v3737_v40  ;;  %v1772_v9 = vrot.slane %v1771_v32, 4  ;;  %v3801_v22 = vpop.f32.mrb[49].mxu1 }
 0x188   : > { %v1562_v42 = vadd.f32 %v3662_v47, %v1369_v43  ;;  %v1704_v46 = vmax.f32 %v1558_v16, 0.0  ;;  %v3803_v19 = vpop.f32.mrb[50].mxu1  ;;  %v1764_v20 = vmax.f32 %v1762_v55, %v1763_v38 }
 0x189   : > { %v1564_v4 = vadd.f32 %v3664_v6, %v1371_v41  ;;  %v1705_v44 = vmax.f32 %v1560_v15, 0.0  ;;  %v3806_v47 = vpop.f32.mrb[51].mxu1  ;;  %v1773_v56 = vmax.f32 %v1771_v32, %v1772_v9 }
 0x18a   : > { %v1706_v36 = vmax.f32 %v1562_v42, 0.0  ;;  %v1765_v38 = vrot.slane %v1764_v20, 2 }
 0x18b   : > { %v1707_v28 = vmax.f32 %v1564_v4, 0.0  ;;  %v1374_v45 = vpop.f32.mrb[12].mxu0 }
 0x18c   : > { %v1778_v35 = vmax.f32 %v1704_v46, %v1706_v36  ;;  %v1375_v13 = vadd.f32 %v1374_v45, %v3735_v57  ;;  %v1376_v8 = vpop.f32.mrb[13].mxu0  ;;  %v1774_v36 = vrot.slane %v1773_v56, 2 }
 0x18d   : > { %v1787_v6 = vmax.f32 %v1705_v44, %v1707_v28  ;;  %v1377_v43 = vadd.f32 %v1376_v8, %v3737_v40  ;;  %v1378_v16 = vpop.f32.mrb[14].mxu0 }
 0x18e   : > { %v1568_v27 = vadd.f32 %v3666_v59, %v1375_v13  ;;  %v1379_v15 = vadd.f32 %v1378_v16, %v3735_v57  ;;  %v1380_v41 = vpop.f32.mrb[15].mxu0  ;;  %v3815_v9 = vpop.f32.mrb[52].mxu1 }
 0x18f   : > { %v1570_v42 = vadd.f32 %v3668_v18, %v1377_v43  ;;  %v1381_v55 = vadd.f32 %v1380_v41, %v3737_v40  ;;  %v3817_v59 = vpop.f32.mrb[53].mxu1  ;;  %v1766_v43 = vmax.f32 %v1764_v20, %v1765_v38 }
 0x190   : > { %v1708_v4 = vmax.f32 %v1568_v27, 0.0  ;;  %v1572_v46 = vadd.f32 %v3670_v23, %v1379_v15  ;;  %v3819_v18 = vpop.f32.mrb[54].mxu1 }
 0x191   : > { %v1709_v45 = vmax.f32 %v1570_v42, 0.0  ;;  %v1574_v32 = vadd.f32 %v3672_v7, %v1381_v55  ;;  %4018 = vst [vmem:[#allocation6_spill] sm:$0xff] %v3819_v18  ;;  %v3822_v15 = vpop.f32.mrb[55].mxu1  ;;  %v1775_v42 = vmax.f32 %v1773_v56, %v1774_v36 }
 0x192   : > { %v1779_v44 = vmax.f32 %v1778_v35, %v1708_v4  ;;  %v1710_v28 = vmax.f32 %v1572_v46, 0.0  ;;  %4019 = vst [vmem:[#allocation7_spill] sm:$0xff] %v3822_v15 }
 0x193   : > { %v1788_v13 = vmax.f32 %v1787_v6, %v1709_v45  ;;  %v1711_v8 = vmax.f32 %v1574_v32, 0.0  ;;  %v1384_v16 = vpop.f32.mrb[16].mxu0  ;;  %v1776_v56 = vrot.slane %v1775_v42, 1 }
 0x194   : > { %v1780_v41 = vmax.f32 %v1779_v44, %v1710_v28  ;;  %v1385_v27 = vadd.f32 %v1384_v16, %v3735_v57  ;;  %v1386_v23 = vpop.f32.mrb[17].mxu0  ;;  %v1767_v44 = vrot.slane %v1766_v43, 1 }
 0x195   : > { %v1789_v7 = vmax.f32 %v1788_v13, %v1711_v8  ;;  %v1387_v55 = vadd.f32 %v1386_v23, %v3737_v40  ;;  %v1388_v35 = vpop.f32.mrb[18].mxu0 }
 0x196   : > { %v1781_v4 = vrot.slane %v1780_v41, 4  ;;  %v1578_v46 = vadd.f32 %v3680_v10, %v1385_v27  ;;  %v1389_v6 = vadd.f32 %v1388_v35, %v3735_v57  ;;  %v1390_v45 = vpop.f32.mrb[19].mxu0  ;;  %v3831_v8 = vpop.f32.mrb[56].mxu1 }
 0x197   : > { %v1790_v32 = vrot.slane %v1789_v7, 4  ;;  %v1580_v20 = vadd.f32 %v3682_v31, %v1387_v55  ;;  %v1391_v38 = vadd.f32 %v1390_v45, %v3737_v40  ;;  %4020 = vst [vmem:[#allocation5_spill] sm:$0xff] %v3831_v8  ;;  %v3833_v35 = vpop.f32.mrb[57].mxu1 }
 0x198   : > { %v1782_v28 = vmax.f32 %v1780_v41, %v1781_v4  ;;  %v1582_v16 = vadd.f32 %v3684_v34, %v1389_v6  ;;  %v1712_v10 = vmax.f32 %v1578_v46, 0.0  ;;  %4021 = vst [vmem:[#allocation8_spill] sm:$0xff] %v3833_v35  ;;  %v3835_v45 = vpop.f32.mrb[58].mxu1  ;;  %v1768_v41 = vmax.f32 %v1766_v43, %v1767_v44 }
 0x199   : > { %v1791_v36 = vmax.f32 %v1789_v7, %v1790_v32  ;;  %v1584_v13 = vadd.f32 %v3686_v50, %v1391_v38  ;;  %v1713_v18 = vmax.f32 %v1580_v20, 0.0  ;;  %4022 = vst [vmem:[#allocation9_spill] sm:$0xff] %v3835_v45  ;;  %v3838_v50 = vpop.f32.mrb[59].mxu1  ;;  %v1777_v32 = vmax.f32 %v1775_v42, %v1776_v56 }
 0x19a   : > { %v1783_v23 = vrot.slane %v1782_v28, 2  ;;  %v1714_v27 = vmax.f32 %v1582_v16, 0.0 }
 0x19b   : > { %v1792_v15 = vrot.slane %v1791_v36, 2  ;;  %v1715_v31 = vmax.f32 %v1584_v13, 0.0  ;;  %v1394_v55 = vpop.f32.mrb[20].mxu0 }
 0x19c   : > { %v1784_v4 = vmax.f32 %v1782_v28, %v1783_v23  ;;  %v1796_v34 = vmax.f32 %v1712_v10, %v1714_v27  ;;  %v1395_v7 = vadd.f32 %v1394_v55, %v3735_v57  ;;  %v1396_v6 = vpop.f32.mrb[21].mxu0  ;;  %v1904_v23 = vpack.c.bf16 %v1768_v41, %v1768_v41 }
 0x19d   : > { %v1793_v38 = vmax.f32 %v1791_v36, %v1792_v15  ;;  %v1805_v46 = vmax.f32 %v1713_v18, %v1715_v31  ;;  %v1397_v16 = vadd.f32 %v1396_v6, %v3737_v40  ;;  %v1398_v35 = vpop.f32.mrb[22].mxu0  ;;  %v1905_v18 = vpack.c.bf16 %v1777_v32, %v1777_v32 }
 0x19e   : > { %v1785_v8 = vrot.slane %v1784_v4, 1  ;;  %v1588_v20 = vadd.f32 %v3688_v21, %v1395_v7  ;;  %v1399_v13 = vadd.f32 %v1398_v35, %v3735_v57  ;;  %v1400_v45 = vpop.f32.mrb[23].mxu0  ;;  %v3847_v31 = vpop.f32.mrb[60].mxu1 }
 0x19f   : > { %v1794_v43 = vrot.slane %v1793_v38, 1  ;;  %v1590_v44 = vadd.f32 %v3690_v58, %v1397_v16  ;;  %v1401_v28 = vadd.f32 %v1400_v45, %v3737_v40  ;;  %v3849_v7 = vpop.f32.mrb[61].mxu1 }
 0x1a0   : > { %v1786_v10 = vmax.f32 %v1784_v4, %v1785_v8  ;;  %v1716_v27 = vmax.f32 %v1588_v20, 0.0  ;;  %v1592_v15 = vadd.f32 %v3692_v33, %v1399_v13  ;;  %v3851_v4 = vpop.f32.mrb[62].mxu1  ;;  %v1975_v33 = vunpack.c.l.b16 %v1904_v23 }
 0x1a1   : > { %v1795_v42 = vmax.f32 %v1793_v38, %v1794_v43  ;;  %v1717_v56 = vmax.f32 %v1590_v44, 0.0  ;;  %v1594_v36 = vadd.f32 %v3694_v63, %v1401_v28  ;;  %v3854_v16 = vpop.f32.mrb[63].mxu1  ;;  %v1976_v20 = vunpack.c.l.b16 %v1905_v18 }
 0x1a2   : > { %v1906_v21 = vpack.c.bf16 %v1786_v10, %v1786_v10  ;;  %v1797_v35 = vmax.f32 %v1796_v34, %v1716_v27  ;;  %v1718_v55 = vmax.f32 %v1592_v15, 0.0 }
 0x1a3   : > { %v1907_v58 = vpack.c.bf16 %v1795_v42, %v1795_v42  ;;  %v1806_v45 = vmax.f32 %v1805_v46, %v1717_v56  ;;  %v1719_v41 = vmax.f32 %v1594_v36, 0.0  ;;  %v1404_v8 = vpop.f32.mrb[24].mxu0 }
 0x1a4   : > { %v1977_v6 = vunpack.c.l.b16 %v1906_v21  ;;  %v1798_v32 = vmax.f32 %v1797_v35, %v1718_v55  ;;  %v1405_v38 = vadd.f32 %v1404_v8, %v3735_v57  ;;  %v1406_v63 = vpop.f32.mrb[25].mxu0 }
 0x1a5   : > { %v1978_v34 = vunpack.c.l.b16 %v1907_v58  ;;  %v1807_v13 = vmax.f32 %v1806_v45, %v1719_v41  ;;  %v1407_v43 = vadd.f32 %v1406_v63, %v3737_v40  ;;  %v1408_v44 = vpop.f32.mrb[26].mxu0 }
 0x1a6   : > { %v1992_v46 = vsel %vm1991_vm5, %v1977_v6, %v1975_v33  ;;  %v1799_v28 = vrot.slane %v1798_v32, 4  ;;  %v1598_v10 = vadd.f32 %v3702_v62, %v1405_v38  ;;  %v1409_v23 = vadd.f32 %v1408_v44, %v3735_v57  ;;  %v1410_v27 = vpop.f32.mrb[27].mxu0 }
 0x1a7   : > { %v2005_v15 = vsel %vm1991_vm5, %v1978_v34, %v1976_v20  ;;  %v1808_v42 = vrot.slane %v1807_v13, 4  ;;  %v1600_v56 = vadd.f32 %v3704_v54, %v1407_v43  ;;  %v1411_v18 = vadd.f32 %v1410_v27, %v3737_v40 }
 0x1a8   : > { %v1800_v36 = vmax.f32 %v1798_v32, %v1799_v28  ;;  %v1602_v21 = vadd.f32 %v3706_v52, %v1409_v23  ;;  %v1720_v45 = vmax.f32 %v1598_v10, 0.0 }
 0x1a9   : > { %v1809_v35 = vmax.f32 %v1807_v13, %v1808_v42  ;;  %v1604_v55 = vadd.f32 %v3708_v49, %v1411_v18  ;;  %v1721_v8 = vmax.f32 %v1600_v56, 0.0 }
 0x1aa   : > { %v1801_v58 = vrot.slane %v1800_v36, 2  ;;  %v1722_v41 = vmax.f32 %v1602_v21, 0.0 }
 0x1ab   : > { %v1810_v62 = vrot.slane %v1809_v35, 2  ;;  %v1723_v33 = vmax.f32 %v1604_v55, 0.0  ;;  %v1414_v6 = vpop.f32.mrb[28].mxu0 }
 0x1ac   : > { %v1802_v38 = vmax.f32 %v1800_v36, %v1801_v58  ;;  %v1814_v63 = vmax.f32 %v1720_v45, %v1722_v41  ;;  %v1415_v20 = vadd.f32 %v1414_v6, %v3735_v57  ;;  %v1416_v54 = vpop.f32.mrb[29].mxu0 }
 0x1ad   : > { %v1811_v34 = vmax.f32 %v1809_v35, %v1810_v62  ;;  %v1823_v43 = vmax.f32 %v1721_v8, %v1723_v33  ;;  %v1417_v32 = vadd.f32 %v1416_v54, %v3737_v40  ;;  %v1418_v52 = vpop.f32.mrb[30].mxu0 }
 0x1ae   : > { %v1803_v13 = vrot.slane %v1802_v38, 1  ;;  %v1608_v49 = vadd.f32 %v3710_v14, %v1415_v20  ;;  %v1419_v44 = vadd.f32 %v1418_v52, %v3735_v57  ;;  %v1420_v28 = vpop.f32.mrb[31].mxu0 }
 0x1af   : > { %v1812_v10 = vrot.slane %v1811_v34, 1  ;;  %v1610_v23 = vadd.f32 %v3712_v37, %v1417_v32  ;;  %v1421_v27 = vadd.f32 %v1420_v28, %v3737_v40 }
 0x1b0   : > { %v1804_v42 = vmax.f32 %v1802_v38, %v1803_v13  ;;  %v1724_v56 = vmax.f32 %v1608_v49, 0.0  ;;  %v1612_v18 = vadd.f32 %v3714_v25, %v1419_v44 }
 0x1b1   : > { %v1813_v36 = vmax.f32 %v1811_v34, %v1812_v10  ;;  %v1725_v21 = vmax.f32 %v1610_v23, 0.0  ;;  %v1614_v35 = vadd.f32 %v3716_v1, %v1421_v27 }
 0x1b2   : > { %v1908_v55 = vpack.c.bf16 %v1804_v42, %v1804_v42  ;;  %v1815_v58 = vmax.f32 %v1814_v63, %v1724_v56  ;;  %v1726_v45 = vmax.f32 %v1612_v18, 0.0 }
 0x1b3   : > { %v1909_v14 = vpack.c.bf16 %v1813_v36, %v1813_v36  ;;  %v1824_v41 = vmax.f32 %v1823_v43, %v1725_v21  ;;  %v1727_v62 = vmax.f32 %v1614_v35, 0.0  ;;  %v1424_v8 = vpop.f32.mrb[32].mxu0 }
 0x1b4   : > { %v1979_v33 = vunpack.c.l.b16 %v1908_v55  ;;  %v1816_v37 = vmax.f32 %v1815_v58, %v1726_v45  ;;  %v1425_v6 = vadd.f32 %v1424_v8, %v3735_v57  ;;  %v1426_v38 = vpop.f32.mrb[33].mxu0 }
 0x1b5   : > { %v1980_v20 = vunpack.c.l.b16 %v1909_v14  ;;  %v1825_v54 = vmax.f32 %v1824_v41, %v1727_v62  ;;  %v1427_v25 = vadd.f32 %v1426_v38, %v3737_v40  ;;  %v1428_v34 = vpop.f32.mrb[34].mxu0 }
 0x1b6   : > { %v1994_v1 = vsel %vm1993_vm6, %v1979_v33, %v1992_v46  ;;  %v1817_v32 = vrot.slane %v1816_v37, 4  ;;  %v1618_v63 = vadd.f32 %v3724_v60, %v1425_v6  ;;  %v1429_v52 = vadd.f32 %v1428_v34, %v3735_v57  ;;  %v1430_v43 = vpop.f32.mrb[35].mxu0 }
 0x1b7   : > { %v1826_v13 = vrot.slane %v1825_v54, 4  ;;  %v1620_v49 = vadd.f32 %v3726_v12, %v1427_v25  ;;  %v1431_v44 = vadd.f32 %v1430_v43, %v3737_v40  ;;  %v2006_v28 = vsel %vm1993_vm6, %v1980_v20, %v2005_v15 }
 0x1b8   : > { %v1818_v10 = vmax.f32 %v1816_v37, %v1817_v32  ;;  %v1622_v23 = vadd.f32 %v3728_v39, %v1429_v52  ;;  %v1728_v56 = vmax.f32 %v1618_v63, 0.0 }
 0x1b9   : > { %v1827_v27 = vmax.f32 %v1825_v54, %v1826_v13  ;;  %v1624_v42 = vadd.f32 %v3730_v0, %v1431_v44  ;;  %v1729_v36 = vmax.f32 %v1620_v49, 0.0 }
 0x1ba   : > { %v1819_v46 = vrot.slane %v1818_v10, 2  ;;  %v1730_v18 = vmax.f32 %v1622_v23, 0.0 }
 0x1bb   : > { %v1828_v60 = vrot.slane %v1827_v27, 2  ;;  %v1731_v21 = vmax.f32 %v1624_v42, 0.0  ;;  %v1434_v35 = vpop.f32.mrb[36].mxu0 }
 0x1bc   : > { %v1820_v55 = vmax.f32 %v1818_v10, %v1819_v46  ;;  %v1832_v58 = vmax.f32 %v1728_v56, %v1730_v18  ;;  %v1435_v12 = vadd.f32 %v1434_v35, %v3735_v57  ;;  %v1436_v45 = vpop.f32.mrb[37].mxu0 }
 0x1bd   : > { %v1829_v14 = vmax.f32 %v1827_v27, %v1828_v60  ;;  %v1841_v15 = vmax.f32 %v1729_v36, %v1731_v21  ;;  %v1437_v41 = vadd.f32 %v1436_v45, %v3737_v40  ;;  %v1438_v39 = vpop.f32.mrb[38].mxu0 }
 0x1be   : > { %v1821_v62 = vrot.slane %v1820_v55, 1  ;;  %v1628_v0 = vadd.f32 %v3739_v48, %v1435_v12  ;;  %v1439_v8 = vadd.f32 %v1438_v39, %v3735_v57  ;;  %v1440_v33 = vpop.f32.mrb[39].mxu0 }
 0x1bf   : > { %v1830_v37 = vrot.slane %v1829_v14, 1  ;;  %v1630_v6 = vadd.f32 %v3741_v17, %v1437_v41  ;;  %v1441_v38 = vadd.f32 %v1440_v33, %v3737_v40 }
 0x1c0   : > { %v1822_v20 = vmax.f32 %v1820_v55, %v1821_v62  ;;  %v1732_v54 = vmax.f32 %v1628_v0, 0.0  ;;  %v1632_v25 = vadd.f32 %v3743_v29, %v1439_v8 }
 0x1c1   : > { %v1831_v34 = vmax.f32 %v1829_v14, %v1830_v37  ;;  %v1733_v32 = vmax.f32 %v1630_v6, 0.0  ;;  %v1634_v63 = vadd.f32 %v3746_v5, %v1441_v38 }
 0x1c2   : > { %v1910_v52 = vpack.c.bf16 %v1822_v20, %v1822_v20  ;;  %v1833_v43 = vmax.f32 %v1832_v58, %v1732_v54  ;;  %v1734_v13 = vmax.f32 %v1632_v25, 0.0 }
 0x1c3   : > { %v1911_v48 = vpack.c.bf16 %v1831_v34, %v1831_v34  ;;  %v1842_v49 = vmax.f32 %v1841_v15, %v1733_v32  ;;  %v1735_v44 = vmax.f32 %v1634_v63, 0.0  ;;  %v1444_v10 = vpop.f32.mrb[40].mxu0 }
 0x1c4   : > { %v1981_v23 = vunpack.c.l.b16 %v1910_v52  ;;  %v1834_v17 = vmax.f32 %v1833_v43, %v1734_v13  ;;  %v1445_v27 = vadd.f32 %v1444_v10, %v3735_v57  ;;  %v1446_v42 = vpop.f32.mrb[41].mxu0 }
 0x1c5   : > { %v1982_v46 = vunpack.c.l.b16 %v1911_v48  ;;  %v1843_v56 = vmax.f32 %v1842_v49, %v1735_v44  ;;  %v1447_v29 = vadd.f32 %v1446_v42, %v3737_v40  ;;  %v1448_v18 = vpop.f32.mrb[42].mxu0 }
 0x1c6   : > { %v1835_v60 = vrot.slane %v1834_v17, 4  ;;  %v1638_v5 = vadd.f32 %v3761_v3, %v1445_v27  ;;  %v1449_v36 = vadd.f32 %v1448_v18, %v3735_v57  ;;  %v1450_v21 = vpop.f32.mrb[43].mxu0  ;;  %v1996_v35 = vsel %vm1995_vm7, %v1981_v23, %v1994_v1 }
 0x1c7   : > { %v1844_v55 = vrot.slane %v1843_v56, 4  ;;  %v1640_v58 = vadd.f32 %v3763_v26, %v1447_v29  ;;  %v1451_v12 = vadd.f32 %v1450_v21, %v3737_v40  ;;  %v2007_v45 = vsel %vm1995_vm7, %v1982_v46, %v2006_v28 }
 0x1c8   : > { %v1836_v14 = vmax.f32 %v1834_v17, %v1835_v60  ;;  %v1642_v15 = vadd.f32 %v3765_v53, %v1449_v36  ;;  %v1736_v3 = vmax.f32 %v1638_v5, 0.0 }
 0x1c9   : > { %v1845_v41 = vmax.f32 %v1843_v56, %v1844_v55  ;;  %v1644_v39 = vadd.f32 %v3768_v30, %v1451_v12  ;;  %v1737_v33 = vmax.f32 %v1640_v58, 0.0 }
 0x1ca   : > { %v1837_v62 = vrot.slane %v1836_v14, 2  ;;  %v1738_v0 = vmax.f32 %v1642_v15, 0.0 }
 0x1cb   : > { %v1846_v8 = vrot.slane %v1845_v41, 2  ;;  %v1739_v37 = vmax.f32 %v1644_v39, 0.0  ;;  %v1454_v1 = vpop.f32.mrb[44].mxu0 }
 0x1cc   : > { %v1838_v6 = vmax.f32 %v1836_v14, %v1837_v62  ;;  %v1850_v38 = vmax.f32 %v1736_v3, %v1738_v0  ;;  %v1455_v26 = vadd.f32 %v1454_v1, %v3735_v57  ;;  %v1456_v20 = vpop.f32.mrb[45].mxu0 }
 0x1cd   : > { %v1847_v54 = vmax.f32 %v1845_v41, %v1846_v8  ;;  %v1859_v28 = vmax.f32 %v1737_v33, %v1739_v37  ;;  %v1457_v25 = vadd.f32 %v1456_v20, %v3737_v40  ;;  %v1458_v53 = vpop.f32.mrb[46].mxu0 }
 0x1ce   : > { %v1839_v34 = vrot.slane %v1838_v6, 1  ;;  %v1648_v30 = vadd.f32 %v3777_v24, %v1455_v26  ;;  %v1459_v32 = vadd.f32 %v1458_v53, %v3735_v57  ;;  %v1460_v63 = vpop.f32.mrb[47].mxu0 }
 0x1cf   : > { %v1848_v52 = vrot.slane %v1847_v54, 1  ;;  %v1650_v43 = vadd.f32 %v3779_v11, %v1457_v25  ;;  %v1461_v13 = vadd.f32 %v1460_v63, %v3737_v40 }
 0x1d0   : > { %v1840_v48 = vmax.f32 %v1838_v6, %v1839_v34  ;;  %v1740_v49 = vmax.f32 %v1648_v30, 0.0  ;;  %v1652_v44 = vadd.f32 %v3781_v51, %v1459_v32 }
 0x1d1   : > { %v1849_v10 = vmax.f32 %v1847_v54, %v1848_v52  ;;  %v1741_v23 = vmax.f32 %v1650_v43, 0.0  ;;  %v1654_v17 = vadd.f32 %v3784_v2, %v1461_v13 }
 0x1d2   : > { %v1912_v27 = vpack.c.bf16 %v1840_v48, %v1840_v48  ;;  %v1851_v42 = vmax.f32 %v1850_v38, %v1740_v49  ;;  %v1742_v46 = vmax.f32 %v1652_v44, 0.0 }
 0x1d3   : > { %v1913_v24 = vpack.c.bf16 %v1849_v10, %v1849_v10  ;;  %v1860_v56 = vmax.f32 %v1859_v28, %v1741_v23  ;;  %v1743_v29 = vmax.f32 %v1654_v17, 0.0  ;;  %v1464_v18 = vpop.f32.mrb[48].mxu0  ;;  %v4023_v10 = vld [vmem:[#allocation6_spill] sm:$0xff] }
 0x1d4   : > { %v1983_v60 = vunpack.c.l.b16 %v1912_v27  ;;  %v1852_v11 = vmax.f32 %v1851_v42, %v1742_v46  ;;  %v1465_v5 = vadd.f32 %v1464_v18, %v3735_v57  ;;  %v1466_v36 = vpop.f32.mrb[49].mxu0  ;;  %v4024_v42 = vld [vmem:[#allocation7_spill] sm:$0xff] }
 0x1d5   : > { %v1984_v21 = vunpack.c.l.b16 %v1913_v24  ;;  %v1861_v55 = vmax.f32 %v1860_v56, %v1743_v29  ;;  %v1467_v51 = vadd.f32 %v1466_v36, %v3737_v40  ;;  %v1468_v58 = vpop.f32.mrb[50].mxu0 }
 0x1d6   : > { %v1853_v12 = vrot.slane %v1852_v11, 4  ;;  %v1658_v2 = vadd.f32 %v3799_v61, %v1465_v5  ;;  %v1469_v14 = vadd.f32 %v1468_v58, %v3735_v57  ;;  %v1470_v15 = vpop.f32.mrb[51].mxu0  ;;  %v1998_v41 = vsel %vm1997_vm8, %v1983_v60, %v1996_v35 }
 0x1d7   : > { %v1862_v39 = vrot.slane %v1861_v55, 4  ;;  %v1660_v62 = vadd.f32 %v3801_v22, %v1467_v51  ;;  %v1471_v3 = vadd.f32 %v1470_v15, %v3737_v40  ;;  %v2008_v0 = vsel %vm1997_vm8, %v1984_v21, %v2007_v45 }
 0x1d8   : > { %v1854_v8 = vmax.f32 %v1852_v11, %v1853_v12  ;;  %v1662_v33 = vadd.f32 %v3803_v19, %v1469_v14  ;;  %v1744_v61 = vmax.f32 %v1658_v2, 0.0  ;;  %v4025_v14 = vld [vmem:[#allocation5_spill] sm:$0xff] }
 0x1d9   : > { %v1863_v37 = vmax.f32 %v1861_v55, %v1862_v39  ;;  %v1664_v1 = vadd.f32 %v3806_v47, %v1471_v3  ;;  %v1745_v20 = vmax.f32 %v1660_v62, 0.0 }
 0x1da   : > { %v1855_v6 = vrot.slane %v1854_v8, 2  ;;  %v1746_v38 = vmax.f32 %v1662_v33, 0.0  ;;  %v4026_v33 = vld [vmem:[#allocation8_spill] sm:$0xff] }
 0x1db   : > { %v1864_v26 = vrot.slane %v1863_v37, 2  ;;  %v1747_v54 = vmax.f32 %v1664_v1, 0.0  ;;  %v1474_v35 = vpop.f32.mrb[52].mxu0 }
 0x1dc   : > { %v1856_v28 = vmax.f32 %v1854_v8, %v1855_v6  ;;  %v1868_v25 = vmax.f32 %v1744_v61, %v1746_v38  ;;  %v1475_v22 = vadd.f32 %v1474_v35, %v3735_v57  ;;  %v1476_v53 = vpop.f32.mrb[53].mxu0  ;;  %v4027_v38 = vld [vmem:[#allocation9_spill] sm:$0xff] }
 0x1dd   : > { %v1865_v34 = vmax.f32 %v1863_v37, %v1864_v26  ;;  %v1877_v45 = vmax.f32 %v1745_v20, %v1747_v54  ;;  %v1477_v30 = vadd.f32 %v1476_v53, %v3737_v40  ;;  %v1478_v19 = vpop.f32.mrb[54].mxu0 }
 0x1de   : > { %v1857_v32 = vrot.slane %v1856_v28, 1  ;;  %v1668_v47 = vadd.f32 %v3815_v9, %v1475_v22  ;;  %v1479_v63 = vadd.f32 %v1478_v19, %v3735_v57  ;;  %v1480_v52 = vpop.f32.mrb[55].mxu0 }
 0x1df   : > { %v1866_v43 = vrot.slane %v1865_v34, 1  ;;  %v1670_v13 = vadd.f32 %v3817_v59, %v1477_v30  ;;  %v1481_v48 = vadd.f32 %v1480_v52, %v3737_v40 }
 0x1e0   : > { %v1858_v49 = vmax.f32 %v1856_v28, %v1857_v32  ;;  %v1748_v44 = vmax.f32 %v1668_v47, 0.0  ;;  %v1672_v23 = vadd.f32 %v4023_v10, %v1479_v63 }
 0x1e1   : > { %v1867_v17 = vmax.f32 %v1865_v34, %v1866_v43  ;;  %v1749_v27 = vmax.f32 %v1670_v13, 0.0  ;;  %v1674_v46 = vadd.f32 %v4024_v42, %v1481_v48 }
 0x1e2   : > { %v1914_v24 = vpack.c.bf16 %v1858_v49, %v1858_v49  ;;  %v1869_v56 = vmax.f32 %v1868_v25, %v1748_v44  ;;  %v1750_v29 = vmax.f32 %v1672_v23, 0.0 }
 0x1e3   : > { %v1915_v9 = vpack.c.bf16 %v1867_v17, %v1867_v17  ;;  %v1878_v18 = vmax.f32 %v1877_v45, %v1749_v27  ;;  %v1751_v60 = vmax.f32 %v1674_v46, 0.0  ;;  %v1484_v11 = vpop.f32.mrb[56].mxu0 }
 0x1e4   : > { %v1985_v5 = vunpack.c.l.b16 %v1914_v24  ;;  %v1870_v59 = vmax.f32 %v1869_v56, %v1750_v29  ;;  %v1485_v36 = vadd.f32 %v1484_v11, %v3735_v57  ;;  %v1486_v21 = vpop.f32.mrb[57].mxu0 }
 0x1e5   : > { %v1986_v55 = vunpack.c.l.b16 %v1915_v9  ;;  %v1879_v51 = vmax.f32 %v1878_v18, %v1751_v60  ;;  %v1487_v58 = vadd.f32 %v1486_v21, %v3737_v40  ;;  %v1488_v12 = vpop.f32.mrb[58].mxu0 }
 0x1e6   : > { %v1871_v2 = vrot.slane %v1870_v59, 4  ;;  %v1678_v15 = vadd.f32 %v4025_v14, %v1485_v36  ;;  %v1489_v39 = vadd.f32 %v1488_v12, %v3735_v57  ;;  %v1490_v62 = vpop.f32.mrb[59].mxu0  ;;  %v2000_v3 = vsel %vm1999_vm9, %v1985_v5, %v1998_v41 }
 0x1e7   : > { %v1880_v8 = vrot.slane %v1879_v51, 4  ;;  %v1680_v37 = vadd.f32 %v4026_v33, %v1487_v58  ;;  %v1491_v1 = vadd.f32 %v1490_v62, %v3737_v40  ;;  %v2009_v6 = vsel %vm1999_vm9, %v1986_v55, %v2008_v0 }
 0x1e8   : > { %v1872_v61 = vmax.f32 %v1870_v59, %v1871_v2  ;;  %v1682_v26 = vadd.f32 %v4027_v38, %v1489_v39  ;;  %v1752_v28 = vmax.f32 %v1678_v15, 0.0 }
 0x1e9   : > { %v1881_v20 = vmax.f32 %v1879_v51, %v1880_v8  ;;  %v1684_v54 = vadd.f32 %v3838_v50, %v1491_v1  ;;  %v1753_v53 = vmax.f32 %v1680_v37, 0.0 }
 0x1ea   : > { %v1873_v35 = vrot.slane %v1872_v61, 2  ;;  %v1754_v25 = vmax.f32 %v1682_v26, 0.0  ;;  %v2289_v26 = vld [vmem:[%s3999_s4] ss:$0 sm:$0xff] }
 0x1eb   : > { %v1882_v22 = vrot.slane %v1881_v20, 2  ;;  %v1755_v34 = vmax.f32 %v1684_v54, 0.0  ;;  %v1494_v41 = vpop.f32.mrb[60].mxu0 }
 0x1ec   : > { %v1874_v45 = vmax.f32 %v1872_v61, %v1873_v35  ;;  %v1886_v30 = vmax.f32 %v1752_v28, %v1754_v25  ;;  %v1495_v19 = vadd.f32 %v1494_v41, %v3735_v57  ;;  %v1496_v32 = vpop.f32.mrb[61].mxu0 }
 0x1ed   : > { %v1883_v47 = vmax.f32 %v1881_v20, %v1882_v22  ;;  %v1895_v0 = vmax.f32 %v1753_v53, %v1755_v34  ;;  %v1497_v63 = vadd.f32 %v1496_v32, %v3737_v40  ;;  %v1498_v52 = vpop.f32.mrb[62].mxu0 }
 0x1ee   : > { %v1875_v43 = vrot.slane %v1874_v45, 1  ;;  %v1688_v50 = vadd.f32 %v3847_v31, %v1495_v19  ;;  %v1499_v13 = vadd.f32 %v1498_v52, %v3735_v57  ;;  %v1500_v48 = vpop.f32.mrb[63].mxu0 }
 0x1ef   : > { %v1884_v49 = vrot.slane %v1883_v47, 1  ;;  %v1690_v44 = vadd.f32 %v3849_v7, %v1497_v63  ;;  %v1501_v10 = vadd.f32 %v1500_v48, %v3737_v40 }
 0x1f0   : > { %v1876_v23 = vmax.f32 %v1874_v45, %v1875_v43  ;;  %v1756_v17 = vmax.f32 %v1688_v50, 0.0  ;;  %v1692_v27 = vadd.f32 %v3851_v4, %v1499_v13 }
 0x1f1   : > { %v1885_v42 = vmax.f32 %v1883_v47, %v1884_v49  ;;  %v1757_v46 = vmax.f32 %v1690_v44, 0.0  ;;  %v1694_v24 = vadd.f32 %v3854_v16, %v1501_v10 }
 0x1f2   : > { %v1916_v56 = vpack.c.bf16 %v1876_v23, %v1876_v23  ;;  %v1887_v29 = vmax.f32 %v1886_v30, %v1756_v17  ;;  %v1758_v9 = vmax.f32 %v1692_v27, 0.0 }
 0x1f3   : > { %v1896_v31 = vmax.f32 %v1895_v0, %v1757_v46  ;;  %v1759_v18 = vmax.f32 %v1694_v24, 0.0  ;;  %v1917_v57 = vpack.c.bf16 %v1885_v42, %v1885_v42 }
 0x1f4   : > { %v1987_v60 = vunpack.c.l.b16 %v1916_v56  ;;  %v1888_v11 = vmax.f32 %v1887_v29, %v1758_v9 }
 0x1f5   : > { %v1897_v7 = vmax.f32 %v1896_v31, %v1759_v18  ;;  %v1988_v5 = vunpack.c.l.b16 %v1917_v57 }
 0x1f6   : > { %v1889_v40 = vrot.slane %v1888_v11, 4  ;;  %v2002_v59 = vsel %vm2001_vm10, %v1987_v60, %v2000_v3 }
 0x1f7   : > { %v1898_v36 = vrot.slane %v1897_v7, 4  ;;  %v2010_v21 = vsel %vm2001_vm10, %v1988_v5, %v2009_v6 }
 0x1f8   : > { %v1890_v4 = vmax.f32 %v1888_v11, %v1889_v40 }
 0x1f9   : > { %v1899_v55 = vmax.f32 %v1897_v7, %v1898_v36 }
 0x1fa   : > { %v1891_v51 = vrot.slane %v1890_v4, 2 }
 0x1fb   : > { %v1900_v58 = vrot.slane %v1899_v55, 2 }
 0x1fc   : > { %v1892_v16 = vmax.f32 %v1890_v4, %v1891_v51 }
 0x1fd   : > { %v1901_v12 = vmax.f32 %v1899_v55, %v1900_v58 }
 0x1fe   : > { %v1893_v2 = vrot.slane %v1892_v16, 1 }
 0x1ff   : > { %v1902_v14 = vrot.slane %v1901_v12, 1 }
 0x200   : > { %v1894_v15 = vmax.f32 %v1892_v16, %v1893_v2 }
 0x201   : > { %v1903_v39 = vmax.f32 %v1901_v12, %v1902_v14 }
 0x202   : > { %v1918_v62 = vpack.c.bf16 %v1894_v15, %v1894_v15 }
 0x203   : > { %v1919_v8 = vpack.c.bf16 %v1903_v39, %v1903_v39 }
 0x204   : > { %v1989_v33 = vunpack.c.l.b16 %v1918_v62 }
 0x205   : > { %v1990_v37 = vunpack.c.l.b16 %v1919_v8 }
 0x206   : > { %v2004_v3 = vsel %vm2003_vm11, %v1989_v33, %v2002_v59 }
 0x207   : > { %v2011_v1 = vsel %vm2003_vm11, %v1990_v37, %v2010_v21  ;;  %v2012_v61 = vpack.c.b16 %v2004_v3, %v2004_v3 }
 0x208   : > { %v2013_v6 = vpack.c.b16 %v2011_v1, %v2011_v1 }
 0x20a   : > { %2144 = vmatprep.mubr.bf16.mxu1 %v2013_v6 }
 0x20b   : > { %2145 = vmatmul.mubr.bf16.vlgmr.msra.gmra.mrb[64].mxu1 %v2012_v61 }
 0x2de   : > { %v2385_v38 = vpop.f32.mrb[64].mxu1 }
 0x2df   : > { %v2386_v20 = vpop.f32.mrb[65].mxu1 }
 0x2e0   : > { %v2387_v54 = vadd.f32 %v2386_v20, %v2385_v38  ;;  %v2388_v35 = vpop.f32.mrb[66].mxu1 }
 0x2e1   : > { %v2389_v28 = vpop.f32.mrb[67].mxu1 }
 0x2e2   : > { %v2147_v25 = vadd.f32 %v2387_v54, %v2289_v26 }
 0x2e4   : > { %2152 = vst [vmem:[%s220_s9] sm:$0xff] %v2147_v25 }
 0x2e5   : > { %2810 = shalt.err (!%p2807_p3)
}
 0x2e6   : > { %s2811_s12 = scalar_lea.hbm %s3953_s14, 128  ;;  %s2815_s6 = scalar_lea.hbm %s4000_s5, 256 }
 0x2e7   : > { %p2812_p4 = scmp.ne.s32.totalorder %s3953_s14, %s2811_s12  ;;  %p2816_p9 = scmp.lt.u32.totalorder %s3953_s14, %s4000_s5 }
 0x2e8   : > { %p2817_p10 = scmp.lt.u32.totalorder %s2815_s6, %s2811_s12  ;;  %p2819_p12 = scmp.lt.u32.totalorder %s2811_s12, %s3953_s14 }
 0x2e9   : > { %p2813_p7 = pnand %p2812_p4, %p2932_p5 }
 0x2ea   : > { %p2818_p11 = por %p2817_p10, %p2816_p9 }
 0x2eb   : > { %p2814_p8 = pneg %p2813_p7 }
 0x2ec   : > { %p2820_p13 = por %p2819_p12, %p2818_p11 }
 0x2ee   : > { %p2821_p0 = pnand %p2820_p13, %p2814_p8 }
 0x2f0   : > { %2824 = shalt.err (!%p2821_p0)
}
 0x2f1   : > { %2520 = dma.vmem_to_hbm [thread:$0]  (%p2932_p5), %s3955_s10, 128, %s3953_s14, %s2154_s15  }
 0x2f2 PF: > { %p2526_p1 = scmp.ge.s32.totalorder %s2859_s21, 2  ;;  %s2179_s8 = sand.u32 1, %s2847_s18  }
 0x2f3   : > { %s2180_s9 = scalar_lea.sflag [#allocation3], %s2179_s8 }
 0x2f4   : > { %p2523_p2 = pnand %p2526_p1, %p2936_p6 }
 0x2f6   : > { %2842 = dma.done.wait (!%p2523_p2), %s2180_s9, 128  }
 0x2f7   : > { %2844 = vsyncadd (!%p2523_p2), %s2180_s9, 4294967168  ;;  %p15_p3 = scmp.ge.s32.totalorder %s2919_s24, 4   ;;  %s4028_s18 = smov %s2851_s19 }
 0x2f8   : > { %s4029_s19 = smov %s2855_s20  ;;  %s4030_s20 = smov %s2930_s27 }
 0x2f9   : > { %s4031_s21 = smov %s2919_s24  ;;  %17 = sbr.rel (!%p15_p3) target bundleno = 3 (0x3), region = 75 }
 0x300   :  { %2185 = vsyncpa [#allocation3], 1 }
 0x301   :  { %2187 = vsyncpa [#allocation3 + $0x1], 1 }

</bundles_post_ra>
